<compile_context>
chip_gen: v6e
topology: v6e:2x2x1
jax: 0.10.0
libtpu: 0.0.40
codegen_flags: <defaults>
</compile_context>

<pallas_src>
import functools

import jax
import jax.numpy as jnp
from jax import lax
from jax.experimental import pallas as pl
from jax.experimental.pallas import tpu as pltpu


def _fused_lstm_kernel(x_ref, wih0_ref, wih_ref, whh_ref, b_ref, h0_ref, c0_ref,
                       out_ref, h_scr, c_scr, act_scr, gx_scr):
    """Fused multi-layer LSTM over one time chunk.

    x_ref    : (T_c*B, D)            bf16  time-major input rows for this chunk
    wih0_ref : (D, 4H)               bf16  layer-0 input-proj weight ([i,f,o,g] order)
    wih_ref  : (max(L-1,1), H, 4H)   bf16  input-proj weights for layers 1..L-1
    whh_ref  : (L, H, 4H)            bf16  recurrent weights (VMEM-resident)
    b_ref    : (L, 1, 4H)            f32   combined biases (b_ih + b_hh)
    h0_ref   : (L, B, H)             f32   initial hidden state
    c0_ref   : (L, B, H)             f32   initial cell state
    out_ref  : (B, T_c, H)           f32   last-layer output chunk (batch-first)
    h_scr    : VMEM (L, B, H) f32          recurrent h (persists across chunks)
    c_scr    : VMEM (L, B, H) f32          recurrent c (persists across chunks)
    act_scr  : VMEM (T_c*B, H) bf16        inter-layer activations for this chunk
    gx_scr   : VMEM (T_c*B, 4H) f32        hoisted per-chunk input-projection gates
    """
    L, H, _ = whh_ref.shape
    B = h0_ref.shape[1]
    T_c = out_ref.shape[1]

    @pl.when(pl.program_id(0) == 0)
    def _():
        h_scr[...] = h0_ref[...]
        c_scr[...] = c0_ref[...]

    for layer in range(L):                       # static Python loop over layers
        last = layer == L - 1

        # Hoisted input projection for the whole chunk: one lane-dense
        # (T_c*B, .) @ (., 4H) bf16 MXU matmul instead of T_c tiny per-step ones.
        if layer == 0:
            gx_scr[...] = (
                jnp.dot(x_ref[...], wih0_ref[...],
                        preferred_element_type=jnp.float32)
                + b_ref[0])
        else:
            gx_scr[...] = (
                jnp.dot(act_scr[...], wih_ref[layer - 1],
                        preferred_element_type=jnp.float32)
                + b_ref[layer])

        w_hh = whh_ref[layer]                    # (H, 4H) bf16, stays in VMEM
        h = h_scr[layer]                         # (B, H) f32
        c = c_scr[layer]                         # (B, H) f32

        # Fully unrolled recurrence over the chunk (static trip count => the
        # LLO scheduler sees straight-line code, all slice offsets static).
        # TODO(synk): switch to lax.fori_loop(..., unroll=4..8) once B*4H gates
        #   exceed a few vregs (B>=64 or H>=512) to avoid spills.
        for t in range(T_c):
            g_x = gx_scr[t * B:(t + 1) * B, :]                    # (B, 4H) f32
            gates = g_x + jnp.dot(h.astype(jnp.bfloat16), w_hh,
                                  preferred_element_type=jnp.float32)

            # Gate order permuted to [i, f, o, g] at parameter-prep time:
            # one sigmoid over the first 3H columns, one tanh over the last H.
            sig = jax.nn.sigmoid(gates[:, :3 * H])
            g_g = jnp.tanh(gates[:, 3 * H:])
            i_g = sig[:, 0 * H:1 * H]
            f_g = sig[:, 1 * H:2 * H]
            o_g = sig[:, 2 * H:3 * H]

            c = f_g * c + i_g * g_g
            h = o_g * jnp.tanh(c)

            if last:
                out_ref[:, t, :] = h.astype(out_ref.dtype)
            else:
                act_scr[t * B:(t + 1) * B, :] = h.astype(act_scr.dtype)

        h_scr[layer] = h
        c_scr[layer] = c


def _reorder_gates(w, hidden):
    """Permute the 4H gate columns from PyTorch's [i, f, g, o] to [i, f, o, g]."""
    return jnp.concatenate(
        [w[..., :2 * hidden], w[..., 3 * hidden:], w[..., 2 * hidden:3 * hidden]],
        axis=-1)


@functools.partial(jax.jit, static_argnames=("t_chunk",))
def lstm_forward(x, params, h0, c0, t_chunk=None):
    """x: (batch, seq, input_size), batch_first like PyTorch.

    params: tuple per layer of (w_ih_T (in,4H), w_hh_T (H,4H), b_sum (1,4H)),
            gate columns in PyTorch order [i, f, g, o].
    h0, c0: (num_layers, batch, hidden).
    Returns the last layer's output: (batch, seq, hidden), f32.
    """
    B, S, D = x.shape
    L = len(params)
    H = params[0][1].shape[0]
    G = 4 * H

    if t_chunk is None:
        t_chunk = min(64, pl.cdiv(S, 8) * 8)     # amortize per-grid-step overhead
    n_chunks = pl.cdiv(S, t_chunk)
    s_pad = n_chunks * t_chunk

    # Time-major, padded, flattened input rows in (t, b) order; bf16 for the MXU.
    x_tm = jnp.transpose(x, (1, 0, 2)).astype(jnp.float32)        # (S, B, D)
    if s_pad != S:
        x_tm = jnp.pad(x_tm, ((0, s_pad - S), (0, 0), (0, 0)))
    x_flat = x_tm.reshape(s_pad * B, D).astype(jnp.bfloat16)      # (s_pad*B, D)

    wih0 = _reorder_gates(params[0][0], H).astype(jnp.bfloat16)           # (D, 4H)
    whh_all = jnp.stack([_reorder_gates(p[1], H) for p in params]
                        ).astype(jnp.bfloat16)                            # (L, H, 4H)
    b_all = jnp.stack([_reorder_gates(p[2], H) for p in params]
                      ).astype(jnp.float32)                               # (L, 1, 4H)
    if L > 1:
        wih_rest = jnp.stack([_reorder_gates(p[0], H) for p in params[1:]]
                             ).astype(jnp.bfloat16)                       # (L-1, H, 4H)
    else:  # dummy, never read when L == 1
        wih_rest = jnp.zeros((1, H, G), jnp.bfloat16)

    h0 = h0.astype(jnp.float32)
    c0 = c0.astype(jnp.float32)

    out = pl.pallas_call(
        _fused_lstm_kernel,
        out_shape=jax.ShapeDtypeStruct((B, s_pad, H), jnp.float32),
        grid_spec=pltpu.PrefetchScalarGridSpec(
            num_scalar_prefetch=0,
            grid=(n_chunks,),
            in_specs=[
                pl.BlockSpec((t_chunk * B, D), lambda c: (c, 0)),   # streamed x chunk
                pl.BlockSpec(wih0.shape, lambda c: (0, 0)),
                pl.BlockSpec(wih_rest.shape, lambda c: (0, 0, 0)),
                pl.BlockSpec(whh_all.shape, lambda c: (0, 0, 0)),
                pl.BlockSpec(b_all.shape, lambda c: (0, 0, 0)),
                pl.BlockSpec((L, B, H), lambda c: (0, 0, 0)),
                pl.BlockSpec((L, B, H), lambda c: (0, 0, 0)),
            ],
            out_specs=pl.BlockSpec((B, t_chunk, H), lambda c: (0, c, 0)),
            scratch_shapes=[
                pltpu.VMEM((L, B, H), jnp.float32),                 # h state
                pltpu.VMEM((L, B, H), jnp.float32),                 # c state
                pltpu.VMEM((t_chunk * B, H), jnp.bfloat16),         # inter-layer acts
                pltpu.VMEM((t_chunk * B, G), jnp.float32),          # hoisted gates
            ],
        ),
        compiler_params=pltpu.CompilerParams(
            # Time chunks carry h/c state: must stay sequential ("arbitrary").
            dimension_semantics=("arbitrary",),
            vmem_limit_bytes=64 * 1024 * 1024),
    )(x_flat, wih0, wih_rest, whh_all, b_all, h0, c0)

    return out[:, :S, :]                                          # (B, S, H)


# ---------------- pure-JAX reference (for correctness check) ----------------
def lstm_reference(x, params, h0, c0):
    xl = jnp.transpose(x, (1, 0, 2)).astype(jnp.float32)          # (S, B, D)
    for l, (wih, whh, b) in enumerate(params):
        H = whh.shape[0]

        def step(carry, x_t):
            h, c = carry
            gates = x_t @ wih + h @ whh + b                       # PyTorch order [i,f,g,o]
            i = jax.nn.sigmoid(gates[:, 0 * H:1 * H])
            f = jax.nn.sigmoid(gates[:, 1 * H:2 * H])
            g = jnp.tanh(gates[:, 2 * H:3 * H])
            o = jax.nn.sigmoid(gates[:, 3 * H:4 * H])
            c_new = f * c + i * g
            h_new = o * jnp.tanh(c_new)
            return (h_new, c_new), h_new

        (_, _), ys = lax.scan(step, (h0[l], c0[l]), xl)
        xl = ys
    return jnp.transpose(xl, (1, 0, 2))


# ---------------- deterministic parameter construction ----------------
def make_lstm_params(key, input_size, hidden_size, num_layers):
    params = []
    k = 1.0 / jnp.sqrt(hidden_size)
    for l in range(num_layers):
        in_dim = input_size if l == 0 else hidden_size
        key, k1, k2, k3, k4 = jax.random.split(key, 5)
        # PyTorch stores (4H, in) / (4H, H); kept transposed for x @ W.
        w_ih = jax.random.uniform(k1, (in_dim, 4 * hidden_size),
                                  minval=-k, maxval=k, dtype=jnp.float32)
        w_hh = jax.random.uniform(k2, (hidden_size, 4 * hidden_size),
                                  minval=-k, maxval=k, dtype=jnp.float32)
        b_ih = jax.random.uniform(k3, (4 * hidden_size,),
                                  minval=-k, maxval=k, dtype=jnp.float32)
        b_hh = jax.random.uniform(k4, (4 * hidden_size,),
                                  minval=-k, maxval=k, dtype=jnp.float32)
        params.append((w_ih, w_hh, (b_ih + b_hh)[None, :]))
    return tuple(params), key


if __name__ == "__main__":
    # Small shapes consistent with the module: batch=2, seq=8, input=4, hidden=32, layers=2.
    input_size, hidden_size, num_layers, batch_size, seq_len = 4, 32, 2, 2, 8

    key = jax.random.PRNGKey(0)
    params, key = make_lstm_params(key, input_size, hidden_size, num_layers)

    key, kx, kh, kc = jax.random.split(key, 4)
    x_enc = jax.random.normal(kx, (batch_size, seq_len, input_size), dtype=jnp.float32)
    # The PyTorch forward draws h_0 / c_0 with torch.randn at forward time; we
    # draw them deterministically here and feed the same values to kernel & reference.
    h0 = jax.random.normal(kh, (num_layers, batch_size, hidden_size), dtype=jnp.float32)
    c0 = jax.random.normal(kc, (num_layers, batch_size, hidden_size), dtype=jnp.float32)

    out = jax.block_until_ready(lstm_forward(x_enc, params, h0, c0))
    ref = lstm_reference(x_enc, params, h0, c0)
    assert out.shape == (batch_size, seq_len, hidden_size)
    # bf16 matmul operands vs. pure-f32 reference => relaxed tolerance.
    assert jnp.allclose(out, ref, atol=3e-2, rtol=3e-2), (
        "mismatch vs reference, max abs err = %.3e"
        % float(jnp.max(jnp.abs(out - ref))))

    # Second case: exercises multi-chunk state carry (pl.when init + persistent
    # h/c scratch) and time-axis padding.
    seq_len2 = 20
    key, kx2, kh2, kc2 = jax.random.split(key, 4)
    x2 = jax.random.normal(kx2, (batch_size, seq_len2, input_size), dtype=jnp.float32)
    h02 = jax.random.normal(kh2, (num_layers, batch_size, hidden_size), dtype=jnp.float32)
    c02 = jax.random.normal(kc2, (num_layers, batch_size, hidden_size), dtype=jnp.float32)
    out2 = jax.block_until_ready(lstm_forward(x2, params, h02, c02, t_chunk=8))
    ref2 = lstm_reference(x2, params, h02, c02)
    assert out2.shape == (batch_size, seq_len2, hidden_size)
    assert jnp.allclose(out2, ref2, atol=3e-2, rtol=3e-2), "multi-chunk mismatch"

    print("KERNEL_OK")
</pallas_src>

<mosaic_0001>
module attributes {stable_mosaic.version = 11 : i64} {
  func.func @_fused_lstm_kernel(%arg0: i32, %arg1: memref<16x4xbf16, #tpu.memory_space<vmem>>, %arg2: memref<4x128xbf16, #tpu.memory_space<vmem>>, %arg3: memref<1x32x128xbf16, #tpu.memory_space<vmem>>, %arg4: memref<2x32x128xbf16, #tpu.memory_space<vmem>>, %arg5: memref<2x1x128xf32, #tpu.memory_space<vmem>>, %arg6: memref<2x2x32xf32, #tpu.memory_space<vmem>>, %arg7: memref<2x2x32xf32, #tpu.memory_space<vmem>>, %arg8: memref<2x8x32xf32, #tpu.memory_space<vmem>>, %arg9: memref<2x2x32xf32, #tpu.memory_space<vmem>>, %arg10: memref<2x2x32xf32, #tpu.memory_space<vmem>>, %arg11: memref<16x32xbf16, #tpu.memory_space<vmem>>, %arg12: memref<16x128xf32, #tpu.memory_space<vmem>>) attributes {dimension_semantics = [#tpu.dimension_semantics<arbitrary>], iteration_bounds = array<i64: 1>, scalar_prefetch = 0 : i64, scratch_operands = 4 : i64, tpu.core_type = #tpu.core_type<tc>, window_params = [{transform_indices = @transform_0, window_bounds = array<i64: 16, 4>}, {pipeline_mode = #tpu.pipeline_mode<synchronous>, transform_indices = @transform_1, window_bounds = array<i64: 4, 128>}, {pipeline_mode = #tpu.pipeline_mode<synchronous>, transform_indices = @transform_2, window_bounds = array<i64: 1, 32, 128>}, {pipeline_mode = #tpu.pipeline_mode<synchronous>, transform_indices = @transform_3, window_bounds = array<i64: 2, 32, 128>}, {pipeline_mode = #tpu.pipeline_mode<synchronous>, transform_indices = @transform_4, window_bounds = array<i64: 2, 1, 128>}, {pipeline_mode = #tpu.pipeline_mode<synchronous>, transform_indices = @transform_5, window_bounds = array<i64: 2, 2, 32>}, {pipeline_mode = #tpu.pipeline_mode<synchronous>, transform_indices = @transform_6, window_bounds = array<i64: 2, 2, 32>}, {transform_indices = @transform_7, window_bounds = array<i64: 2, 8, 32>}]} {
    %c0_i32 = arith.constant 0 : i32
    %0 = arith.cmpi eq, %arg0, %c0_i32 : i32
    %1 = arith.extui %0 : i1 to i32
    %c0_i32_0 = arith.constant 0 : i32
    %2 = arith.cmpi ne, %1, %c0_i32_0 : i32
    scf.if %2 {
      %c0_143 = arith.constant 0 : index
      %c0_144 = arith.constant 0 : index
      %c0_145 = arith.constant 0 : index
      %404 = vector.load %arg6[%c0_143, %c0_144, %c0_145] : memref<2x2x32xf32, #tpu.memory_space<vmem>>, vector<2x2x32xf32>
      %c0_146 = arith.constant 0 : index
      %c0_147 = arith.constant 0 : index
      %c0_148 = arith.constant 0 : index
      %405 = vector.load %arg9[%c0_146, %c0_147, %c0_148] : memref<2x2x32xf32, #tpu.memory_space<vmem>>, vector<2x2x32xf32>
      tpu.vector_store %arg9[%c0_146, %c0_147, %c0_148], %404 {strides = array<i32>} : memref<2x2x32xf32, #tpu.memory_space<vmem>>, vector<2x2x32xf32>,
      %c0_149 = arith.constant 0 : index
      %c0_150 = arith.constant 0 : index
      %c0_151 = arith.constant 0 : index
      %406 = vector.load %arg7[%c0_149, %c0_150, %c0_151] : memref<2x2x32xf32, #tpu.memory_space<vmem>>, vector<2x2x32xf32>
      %c0_152 = arith.constant 0 : index
      %c0_153 = arith.constant 0 : index
      %c0_154 = arith.constant 0 : index
      %407 = vector.load %arg10[%c0_152, %c0_153, %c0_154] : memref<2x2x32xf32, #tpu.memory_space<vmem>>, vector<2x2x32xf32>
      tpu.vector_store %arg10[%c0_152, %c0_153, %c0_154], %406 {strides = array<i32>} : memref<2x2x32xf32, #tpu.memory_space<vmem>>, vector<2x2x32xf32>,
    } else {
    }
    %c0 = arith.constant 0 : index
    %c0_1 = arith.constant 0 : index
    %3 = vector.load %arg1[%c0, %c0_1] : memref<16x4xbf16, #tpu.memory_space<vmem>>, vector<16x4xbf16>
    %c0_2 = arith.constant 0 : index
    %c0_3 = arith.constant 0 : index
    %4 = vector.load %arg2[%c0_2, %c0_3] : memref<4x128xbf16, #tpu.memory_space<vmem>>, vector<4x128xbf16>
    %cst = arith.constant dense<0.000000e+00> : vector<16x128xf32>
    %5 = tpu.matmul %3, %4, %cst {dimension_numbers = #tpu.dot_dimension_numbers<[1], [0], [0], [1], [0, 0, 1, 1], [], []>} : vector<16x4xbf16>, vector<4x128xbf16>, vector<16x128xf32> -> vector<16x128xf32>
    %c0_4 = arith.constant 0 : index
    %c0_5 = arith.constant 0 : index
    %c0_6 = arith.constant 0 : index
    %6 = vector.load %arg5[%c0_4, %c0_5, %c0_6] : memref<2x1x128xf32, #tpu.memory_space<vmem>>, vector<1x1x128xf32>
    %7 = vector.shape_cast %6 : vector<1x1x128xf32> to vector<1x128xf32>
    %8 = vector.broadcast %7 : vector<1x128xf32> to vector<16x128xf32>
    %9 = arith.addf %5, %8 : vector<16x128xf32>
    %c0_7 = arith.constant 0 : index
    %c0_8 = arith.constant 0 : index
    %10 = vector.load %arg12[%c0_7, %c0_8] : memref<16x128xf32, #tpu.memory_space<vmem>>, vector<16x128xf32>
    tpu.vector_store %arg12[%c0_7, %c0_8], %9 {strides = array<i32>} : memref<16x128xf32, #tpu.memory_space<vmem>>, vector<16x128xf32>,
    %c0_9 = arith.constant 0 : index
    %c0_10 = arith.constant 0 : index
    %c0_11 = arith.constant 0 : index
    %11 = vector.load %arg4[%c0_9, %c0_10, %c0_11] : memref<2x32x128xbf16, #tpu.memory_space<vmem>>, vector<1x32x128xbf16>
    %12 = vector.shape_cast %11 : vector<1x32x128xbf16> to vector<32x128xbf16>
    %c0_12 = arith.constant 0 : index
    %c0_13 = arith.constant 0 : index
    %c0_14 = arith.constant 0 : index
    %13 = vector.load %arg9[%c0_12, %c0_13, %c0_14] : memref<2x2x32xf32, #tpu.memory_space<vmem>>, vector<1x2x32xf32>
    %14 = vector.shape_cast %13 : vector<1x2x32xf32> to vector<2x32xf32>
    %c0_15 = arith.constant 0 : index
    %c0_16 = arith.constant 0 : index
    %c0_17 = arith.constant 0 : index
    %15 = vector.load %arg10[%c0_15, %c0_16, %c0_17] : memref<2x2x32xf32, #tpu.memory_space<vmem>>, vector<1x2x32xf32>
    %16 = vector.shape_cast %15 : vector<1x2x32xf32> to vector<2x32xf32>
    %c0_18 = arith.constant 0 : index
    %c0_19 = arith.constant 0 : index
    %17 = vector.load %arg12[%c0_18, %c0_19] : memref<16x128xf32, #tpu.memory_space<vmem>>, vector<2x128xf32>
    %18 = arith.truncf %14 : vector<2x32xf32> to vector<2x32xbf16>
    %cst_20 = arith.constant dense<0.000000e+00> : vector<2x128xf32>
    %19 = tpu.matmul %18, %12, %cst_20 {dimension_numbers = #tpu.dot_dimension_numbers<[1], [0], [0], [1], [0, 0, 1, 1], [], []>} : vector<2x32xbf16>, vector<32x128xbf16>, vector<2x128xf32> -> vector<2x128xf32>
    %20 = arith.addf %17, %19 : vector<2x128xf32>
    %21 = vector.extract_strided_slice %20 {offsets = [0, 0], sizes = [2, 96], strides = [1, 1]} : vector<2x128xf32> to vector<2x96xf32>
    %22 = arith.negf %21 : vector<2x96xf32>
    %23 = math.exp %22 : vector<2x96xf32>
    %cst_21 = arith.constant 1.000000e+00 : f32
    %24 = vector.broadcast %cst_21 : f32 to vector<2x96xf32>
    %25 = arith.addf %24, %23 : vector<2x96xf32>
    %26 = arith.divf %24, %25 : vector<2x96xf32>
    %27 = vector.extract_strided_slice %20 {offsets = [0, 96], sizes = [2, 32], strides = [1, 1]} : vector<2x128xf32> to vector<2x32xf32>
    %28 = math.tanh %27 : vector<2x32xf32>
    %29 = vector.extract_strided_slice %26 {offsets = [0, 0], sizes = [2, 32], strides = [1, 1]} : vector<2x96xf32> to vector<2x32xf32>
    %30 = vector.extract_strided_slice %26 {offsets = [0, 32], sizes = [2, 32], strides = [1, 1]} : vector<2x96xf32> to vector<2x32xf32>
    %31 = vector.extract_strided_slice %26 {offsets = [0, 64], sizes = [2, 32], strides = [1, 1]} : vector<2x96xf32> to vector<2x32xf32>
    %32 = arith.mulf %30, %16 : vector<2x32xf32>
    %33 = arith.mulf %29, %28 : vector<2x32xf32>
    %34 = arith.addf %32, %33 : vector<2x32xf32>
    %35 = math.tanh %34 : vector<2x32xf32>
    %36 = arith.mulf %31, %35 : vector<2x32xf32>
    %37 = arith.truncf %36 : vector<2x32xf32> to vector<2x32xbf16>
    %c0_22 = arith.constant 0 : index
    %c0_23 = arith.constant 0 : index
    %38 = vector.load %arg11[%c0_22, %c0_23] : memref<16x32xbf16, #tpu.memory_space<vmem>>, vector<2x32xbf16>
    tpu.vector_store %arg11[%c0_22, %c0_23], %37 {strides = array<i32>} : memref<16x32xbf16, #tpu.memory_space<vmem>>, vector<2x32xbf16>,
    %c2 = arith.constant 2 : index
    %c0_24 = arith.constant 0 : index
    %39 = vector.load %arg12[%c2, %c0_24] : memref<16x128xf32, #tpu.memory_space<vmem>>, vector<2x128xf32>
    %40 = arith.truncf %36 : vector<2x32xf32> to vector<2x32xbf16>
    %cst_25 = arith.constant dense<0.000000e+00> : vector<2x128xf32>
    %41 = tpu.matmul %40, %12, %cst_25 {dimension_numbers = #tpu.dot_dimension_numbers<[1], [0], [0], [1], [0, 0, 1, 1], [], []>} : vector<2x32xbf16>, vector<32x128xbf16>, vector<2x128xf32> -> vector<2x128xf32>
    %42 = arith.addf %39, %41 : vector<2x128xf32>
    %43 = vector.extract_strided_slice %42 {offsets = [0, 0], sizes = [2, 96], strides = [1, 1]} : vector<2x128xf32> to vector<2x96xf32>
    %44 = arith.negf %43 : vector<2x96xf32>
    %45 = math.exp %44 : vector<2x96xf32>
    %cst_26 = arith.constant 1.000000e+00 : f32
    %46 = vector.broadcast %cst_26 : f32 to vector<2x96xf32>
    %47 = arith.addf %46, %45 : vector<2x96xf32>
    %48 = arith.divf %46, %47 : vector<2x96xf32>
    %49 = vector.extract_strided_slice %42 {offsets = [0, 96], sizes = [2, 32], strides = [1, 1]} : vector<2x128xf32> to vector<2x32xf32>
    %50 = math.tanh %49 : vector<2x32xf32>
    %51 = vector.extract_strided_slice %48 {offsets = [0, 0], sizes = [2, 32], strides = [1, 1]} : vector<2x96xf32> to vector<2x32xf32>
    %52 = vector.extract_strided_slice %48 {offsets = [0, 32], sizes = [2, 32], strides = [1, 1]} : vector<2x96xf32> to vector<2x32xf32>
    %53 = vector.extract_strided_slice %48 {offsets = [0, 64], sizes = [2, 32], strides = [1, 1]} : vector<2x96xf32> to vector<2x32xf32>
    %54 = arith.mulf %52, %34 : vector<2x32xf32>
    %55 = arith.mulf %51, %50 : vector<2x32xf32>
    %56 = arith.addf %54, %55 : vector<2x32xf32>
    %57 = math.tanh %56 : vector<2x32xf32>
    %58 = arith.mulf %53, %57 : vector<2x32xf32>
    %59 = arith.truncf %58 : vector<2x32xf32> to vector<2x32xbf16>
    %c2_27 = arith.constant 2 : index
    %c0_28 = arith.constant 0 : index
    %60 = vector.load %arg11[%c2_27, %c0_28] : memref<16x32xbf16, #tpu.memory_space<vmem>>, vector<2x32xbf16>
    tpu.vector_store %arg11[%c2_27, %c0_28], %59 {strides = array<i32>} : memref<16x32xbf16, #tpu.memory_space<vmem>>, vector<2x32xbf16>,
    %c4 = arith.constant 4 : index
    %c0_29 = arith.constant 0 : index
    %61 = vector.load %arg12[%c4, %c0_29] : memref<16x128xf32, #tpu.memory_space<vmem>>, vector<2x128xf32>
    %62 = arith.truncf %58 : vector<2x32xf32> to vector<2x32xbf16>
    %cst_30 = arith.constant dense<0.000000e+00> : vector<2x128xf32>
    %63 = tpu.matmul %62, %12, %cst_30 {dimension_numbers = #tpu.dot_dimension_numbers<[1], [0], [0], [1], [0, 0, 1, 1], [], []>} : vector<2x32xbf16>, vector<32x128xbf16>, vector<2x128xf32> -> vector<2x128xf32>
    %64 = arith.addf %61, %63 : vector<2x128xf32>
    %65 = vector.extract_strided_slice %64 {offsets = [0, 0], sizes = [2, 96], strides = [1, 1]} : vector<2x128xf32> to vector<2x96xf32>
    %66 = arith.negf %65 : vector<2x96xf32>
    %67 = math.exp %66 : vector<2x96xf32>
    %cst_31 = arith.constant 1.000000e+00 : f32
    %68 = vector.broadcast %cst_31 : f32 to vector<2x96xf32>
    %69 = arith.addf %68, %67 : vector<2x96xf32>
    %70 = arith.divf %68, %69 : vector<2x96xf32>
    %71 = vector.extract_strided_slice %64 {offsets = [0, 96], sizes = [2, 32], strides = [1, 1]} : vector<2x128xf32> to vector<2x32xf32>
    %72 = math.tanh %71 : vector<2x32xf32>
    %73 = vector.extract_strided_slice %70 {offsets = [0, 0], sizes = [2, 32], strides = [1, 1]} : vector<2x96xf32> to vector<2x32xf32>
    %74 = vector.extract_strided_slice %70 {offsets = [0, 32], sizes = [2, 32], strides = [1, 1]} : vector<2x96xf32> to vector<2x32xf32>
    %75 = vector.extract_strided_slice %70 {offsets = [0, 64], sizes = [2, 32], strides = [1, 1]} : vector<2x96xf32> to vector<2x32xf32>
    %76 = arith.mulf %74, %56 : vector<2x32xf32>
    %77 = arith.mulf %73, %72 : vector<2x32xf32>
    %78 = arith.addf %76, %77 : vector<2x32xf32>
    %79 = math.tanh %78 : vector<2x32xf32>
    %80 = arith.mulf %75, %79 : vector<2x32xf32>
    %81 = arith.truncf %80 : vector<2x32xf32> to vector<2x32xbf16>
    %c4_32 = arith.constant 4 : index
    %c0_33 = arith.constant 0 : index
    %82 = vector.load %arg11[%c4_32, %c0_33] : memref<16x32xbf16, #tpu.memory_space<vmem>>, vector<2x32xbf16>
    tpu.vector_store %arg11[%c4_32, %c0_33], %81 {strides = array<i32>} : memref<16x32xbf16, #tpu.memory_space<vmem>>, vector<2x32xbf16>,
    %c6 = arith.constant 6 : index
    %c0_34 = arith.constant 0 : index
    %83 = vector.load %arg12[%c6, %c0_34] : memref<16x128xf32, #tpu.memory_space<vmem>>, vector<2x128xf32>
    %84 = arith.truncf %80 : vector<2x32xf32> to vector<2x32xbf16>
    %cst_35 = arith.constant dense<0.000000e+00> : vector<2x128xf32>
    %85 = tpu.matmul %84, %12, %cst_35 {dimension_numbers = #tpu.dot_dimension_numbers<[1], [0], [0], [1], [0, 0, 1, 1], [], []>} : vector<2x32xbf16>, vector<32x128xbf16>, vector<2x128xf32> -> vector<2x128xf32>
    %86 = arith.addf %83, %85 : vector<2x128xf32>
    %87 = vector.extract_strided_slice %86 {offsets = [0, 0], sizes = [2, 96], strides = [1, 1]} : vector<2x128xf32> to vector<2x96xf32>
    %88 = arith.negf %87 : vector<2x96xf32>
    %89 = math.exp %88 : vector<2x96xf32>
    %cst_36 = arith.constant 1.000000e+00 : f32
    %90 = vector.broadcast %cst_36 : f32 to vector<2x96xf32>
    %91 = arith.addf %90, %89 : vector<2x96xf32>
    %92 = arith.divf %90, %91 : vector<2x96xf32>
    %93 = vector.extract_strided_slice %86 {offsets = [0, 96], sizes = [2, 32], strides = [1, 1]} : vector<2x128xf32> to vector<2x32xf32>
    %94 = math.tanh %93 : vector<2x32xf32>
    %95 = vector.extract_strided_slice %92 {offsets = [0, 0], sizes = [2, 32], strides = [1, 1]} : vector<2x96xf32> to vector<2x32xf32>
    %96 = vector.extract_strided_slice %92 {offsets = [0, 32], sizes = [2, 32], strides = [1, 1]} : vector<2x96xf32> to vector<2x32xf32>
    %97 = vector.extract_strided_slice %92 {offsets = [0, 64], sizes = [2, 32], strides = [1, 1]} : vector<2x96xf32> to vector<2x32xf32>
    %98 = arith.mulf %96, %78 : vector<2x32xf32>
    %99 = arith.mulf %95, %94 : vector<2x32xf32>
    %100 = arith.addf %98, %99 : vector<2x32xf32>
    %101 = math.tanh %100 : vector<2x32xf32>
    %102 = arith.mulf %97, %101 : vector<2x32xf32>
    %103 = arith.truncf %102 : vector<2x32xf32> to vector<2x32xbf16>
    %c6_37 = arith.constant 6 : index
    %c0_38 = arith.constant 0 : index
    %104 = vector.load %arg11[%c6_37, %c0_38] : memref<16x32xbf16, #tpu.memory_space<vmem>>, vector<2x32xbf16>
    tpu.vector_store %arg11[%c6_37, %c0_38], %103 {strides = array<i32>} : memref<16x32xbf16, #tpu.memory_space<vmem>>, vector<2x32xbf16>,
    %c8 = arith.constant 8 : index
    %c0_39 = arith.constant 0 : index
    %105 = vector.load %arg12[%c8, %c0_39] : memref<16x128xf32, #tpu.memory_space<vmem>>, vector<2x128xf32>
    %106 = arith.truncf %102 : vector<2x32xf32> to vector<2x32xbf16>
    %cst_40 = arith.constant dense<0.000000e+00> : vector<2x128xf32>
    %107 = tpu.matmul %106, %12, %cst_40 {dimension_numbers = #tpu.dot_dimension_numbers<[1], [0], [0], [1], [0, 0, 1, 1], [], []>} : vector<2x32xbf16>, vector<32x128xbf16>, vector<2x128xf32> -> vector<2x128xf32>
    %108 = arith.addf %105, %107 : vector<2x128xf32>
    %109 = vector.extract_strided_slice %108 {offsets = [0, 0], sizes = [2, 96], strides = [1, 1]} : vector<2x128xf32> to vector<2x96xf32>
    %110 = arith.negf %109 : vector<2x96xf32>
    %111 = math.exp %110 : vector<2x96xf32>
    %cst_41 = arith.constant 1.000000e+00 : f32
    %112 = vector.broadcast %cst_41 : f32 to vector<2x96xf32>
    %113 = arith.addf %112, %111 : vector<2x96xf32>
    %114 = arith.divf %112, %113 : vector<2x96xf32>
    %115 = vector.extract_strided_slice %108 {offsets = [0, 96], sizes = [2, 32], strides = [1, 1]} : vector<2x128xf32> to vector<2x32xf32>
    %116 = math.tanh %115 : vector<2x32xf32>
    %117 = vector.extract_strided_slice %114 {offsets = [0, 0], sizes = [2, 32], strides = [1, 1]} : vector<2x96xf32> to vector<2x32xf32>
    %118 = vector.extract_strided_slice %114 {offsets = [0, 32], sizes = [2, 32], strides = [1, 1]} : vector<2x96xf32> to vector<2x32xf32>
    %119 = vector.extract_strided_slice %114 {offsets = [0, 64], sizes = [2, 32], strides = [1, 1]} : vector<2x96xf32> to vector<2x32xf32>
    %120 = arith.mulf %118, %100 : vector<2x32xf32>
    %121 = arith.mulf %117, %116 : vector<2x32xf32>
    %122 = arith.addf %120, %121 : vector<2x32xf32>
    %123 = math.tanh %122 : vector<2x32xf32>
    %124 = arith.mulf %119, %123 : vector<2x32xf32>
    %125 = arith.truncf %124 : vector<2x32xf32> to vector<2x32xbf16>
    %c8_42 = arith.constant 8 : index
    %c0_43 = arith.constant 0 : index
    %126 = vector.load %arg11[%c8_42, %c0_43] : memref<16x32xbf16, #tpu.memory_space<vmem>>, vector<2x32xbf16>
    tpu.vector_store %arg11[%c8_42, %c0_43], %125 {strides = array<i32>} : memref<16x32xbf16, #tpu.memory_space<vmem>>, vector<2x32xbf16>,
    %c10 = arith.constant 10 : index
    %c0_44 = arith.constant 0 : index
    %127 = vector.load %arg12[%c10, %c0_44] : memref<16x128xf32, #tpu.memory_space<vmem>>, vector<2x128xf32>
    %128 = arith.truncf %124 : vector<2x32xf32> to vector<2x32xbf16>
    %cst_45 = arith.constant dense<0.000000e+00> : vector<2x128xf32>
    %129 = tpu.matmul %128, %12, %cst_45 {dimension_numbers = #tpu.dot_dimension_numbers<[1], [0], [0], [1], [0, 0, 1, 1], [], []>} : vector<2x32xbf16>, vector<32x128xbf16>, vector<2x128xf32> -> vector<2x128xf32>
    %130 = arith.addf %127, %129 : vector<2x128xf32>
    %131 = vector.extract_strided_slice %130 {offsets = [0, 0], sizes = [2, 96], strides = [1, 1]} : vector<2x128xf32> to vector<2x96xf32>
    %132 = arith.negf %131 : vector<2x96xf32>
    %133 = math.exp %132 : vector<2x96xf32>
    %cst_46 = arith.constant 1.000000e+00 : f32
    %134 = vector.broadcast %cst_46 : f32 to vector<2x96xf32>
    %135 = arith.addf %134, %133 : vector<2x96xf32>
    %136 = arith.divf %134, %135 : vector<2x96xf32>
    %137 = vector.extract_strided_slice %130 {offsets = [0, 96], sizes = [2, 32], strides = [1, 1]} : vector<2x128xf32> to vector<2x32xf32>
    %138 = math.tanh %137 : vector<2x32xf32>
    %139 = vector.extract_strided_slice %136 {offsets = [0, 0], sizes = [2, 32], strides = [1, 1]} : vector<2x96xf32> to vector<2x32xf32>
    %140 = vector.extract_strided_slice %136 {offsets = [0, 32], sizes = [2, 32], strides = [1, 1]} : vector<2x96xf32> to vector<2x32xf32>
    %141 = vector.extract_strided_slice %136 {offsets = [0, 64], sizes = [2, 32], strides = [1, 1]} : vector<2x96xf32> to vector<2x32xf32>
    %142 = arith.mulf %140, %122 : vector<2x32xf32>
    %143 = arith.mulf %139, %138 : vector<2x32xf32>
    %144 = arith.addf %142, %143 : vector<2x32xf32>
    %145 = math.tanh %144 : vector<2x32xf32>
    %146 = arith.mulf %141, %145 : vector<2x32xf32>
    %147 = arith.truncf %146 : vector<2x32xf32> to vector<2x32xbf16>
    %c10_47 = arith.constant 10 : index
    %c0_48 = arith.constant 0 : index
    %148 = vector.load %arg11[%c10_47, %c0_48] : memref<16x32xbf16, #tpu.memory_space<vmem>>, vector<2x32xbf16>
    tpu.vector_store %arg11[%c10_47, %c0_48], %147 {strides = array<i32>} : memref<16x32xbf16, #tpu.memory_space<vmem>>, vector<2x32xbf16>,
    %c12 = arith.constant 12 : index
    %c0_49 = arith.constant 0 : index
    %149 = vector.load %arg12[%c12, %c0_49] : memref<16x128xf32, #tpu.memory_space<vmem>>, vector<2x128xf32>
    %150 = arith.truncf %146 : vector<2x32xf32> to vector<2x32xbf16>
    %cst_50 = arith.constant dense<0.000000e+00> : vector<2x128xf32>
    %151 = tpu.matmul %150, %12, %cst_50 {dimension_numbers = #tpu.dot_dimension_numbers<[1], [0], [0], [1], [0, 0, 1, 1], [], []>} : vector<2x32xbf16>, vector<32x128xbf16>, vector<2x128xf32> -> vector<2x128xf32>
    %152 = arith.addf %149, %151 : vector<2x128xf32>
    %153 = vector.extract_strided_slice %152 {offsets = [0, 0], sizes = [2, 96], strides = [1, 1]} : vector<2x128xf32> to vector<2x96xf32>
    %154 = arith.negf %153 : vector<2x96xf32>
    %155 = math.exp %154 : vector<2x96xf32>
    %cst_51 = arith.constant 1.000000e+00 : f32
    %156 = vector.broadcast %cst_51 : f32 to vector<2x96xf32>
    %157 = arith.addf %156, %155 : vector<2x96xf32>
    %158 = arith.divf %156, %157 : vector<2x96xf32>
    %159 = vector.extract_strided_slice %152 {offsets = [0, 96], sizes = [2, 32], strides = [1, 1]} : vector<2x128xf32> to vector<2x32xf32>
    %160 = math.tanh %159 : vector<2x32xf32>
    %161 = vector.extract_strided_slice %158 {offsets = [0, 0], sizes = [2, 32], strides = [1, 1]} : vector<2x96xf32> to vector<2x32xf32>
    %162 = vector.extract_strided_slice %158 {offsets = [0, 32], sizes = [2, 32], strides = [1, 1]} : vector<2x96xf32> to vector<2x32xf32>
    %163 = vector.extract_strided_slice %158 {offsets = [0, 64], sizes = [2, 32], strides = [1, 1]} : vector<2x96xf32> to vector<2x32xf32>
    %164 = arith.mulf %162, %144 : vector<2x32xf32>
    %165 = arith.mulf %161, %160 : vector<2x32xf32>
    %166 = arith.addf %164, %165 : vector<2x32xf32>
    %167 = math.tanh %166 : vector<2x32xf32>
    %168 = arith.mulf %163, %167 : vector<2x32xf32>
    %169 = arith.truncf %168 : vector<2x32xf32> to vector<2x32xbf16>
    %c12_52 = arith.constant 12 : index
    %c0_53 = arith.constant 0 : index
    %170 = vector.load %arg11[%c12_52, %c0_53] : memref<16x32xbf16, #tpu.memory_space<vmem>>, vector<2x32xbf16>
    tpu.vector_store %arg11[%c12_52, %c0_53], %169 {strides = array<i32>} : memref<16x32xbf16, #tpu.memory_space<vmem>>, vector<2x32xbf16>,
    %c14 = arith.constant 14 : index
    %c0_54 = arith.constant 0 : index
    %171 = vector.load %arg12[%c14, %c0_54] : memref<16x128xf32, #tpu.memory_space<vmem>>, vector<2x128xf32>
    %172 = arith.truncf %168 : vector<2x32xf32> to vector<2x32xbf16>
    %cst_55 = arith.constant dense<0.000000e+00> : vector<2x128xf32>
    %173 = tpu.matmul %172, %12, %cst_55 {dimension_numbers = #tpu.dot_dimension_numbers<[1], [0], [0], [1], [0, 0, 1, 1], [], []>} : vector<2x32xbf16>, vector<32x128xbf16>, vector<2x128xf32> -> vector<2x128xf32>
    %174 = arith.addf %171, %173 : vector<2x128xf32>
    %175 = vector.extract_strided_slice %174 {offsets = [0, 0], sizes = [2, 96], strides = [1, 1]} : vector<2x128xf32> to vector<2x96xf32>
    %176 = arith.negf %175 : vector<2x96xf32>
    %177 = math.exp %176 : vector<2x96xf32>
    %cst_56 = arith.constant 1.000000e+00 : f32
    %178 = vector.broadcast %cst_56 : f32 to vector<2x96xf32>
    %179 = arith.addf %178, %177 : vector<2x96xf32>
    %180 = arith.divf %178, %179 : vector<2x96xf32>
    %181 = vector.extract_strided_slice %174 {offsets = [0, 96], sizes = [2, 32], strides = [1, 1]} : vector<2x128xf32> to vector<2x32xf32>
    %182 = math.tanh %181 : vector<2x32xf32>
    %183 = vector.extract_strided_slice %180 {offsets = [0, 0], sizes = [2, 32], strides = [1, 1]} : vector<2x96xf32> to vector<2x32xf32>
    %184 = vector.extract_strided_slice %180 {offsets = [0, 32], sizes = [2, 32], strides = [1, 1]} : vector<2x96xf32> to vector<2x32xf32>
    %185 = vector.extract_strided_slice %180 {offsets = [0, 64], sizes = [2, 32], strides = [1, 1]} : vector<2x96xf32> to vector<2x32xf32>
    %186 = arith.mulf %184, %166 : vector<2x32xf32>
    %187 = arith.mulf %183, %182 : vector<2x32xf32>
    %188 = arith.addf %186, %187 : vector<2x32xf32>
    %189 = math.tanh %188 : vector<2x32xf32>
    %190 = arith.mulf %185, %189 : vector<2x32xf32>
    %191 = arith.truncf %190 : vector<2x32xf32> to vector<2x32xbf16>
    %c14_57 = arith.constant 14 : index
    %c0_58 = arith.constant 0 : index
    %192 = vector.load %arg11[%c14_57, %c0_58] : memref<16x32xbf16, #tpu.memory_space<vmem>>, vector<2x32xbf16>
    tpu.vector_store %arg11[%c14_57, %c0_58], %191 {strides = array<i32>} : memref<16x32xbf16, #tpu.memory_space<vmem>>, vector<2x32xbf16>,
    %c0_59 = arith.constant 0 : index
    %c0_60 = arith.constant 0 : index
    %c0_61 = arith.constant 0 : index
    %193 = vector.load %arg9[%c0_59, %c0_60, %c0_61] : memref<2x2x32xf32, #tpu.memory_space<vmem>>, vector<1x2x32xf32>
    %194 = vector.shape_cast %193 : vector<1x2x32xf32> to vector<2x32xf32>
    %195 = vector.shape_cast %190 : vector<2x32xf32> to vector<1x2x32xf32>
    tpu.vector_store %arg9[%c0_59, %c0_60, %c0_61], %195 {strides = array<i32>} : memref<2x2x32xf32, #tpu.memory_space<vmem>>, vector<1x2x32xf32>,
    %c0_62 = arith.constant 0 : index
    %c0_63 = arith.constant 0 : index
    %c0_64 = arith.constant 0 : index
    %196 = vector.load %arg10[%c0_62, %c0_63, %c0_64] : memref<2x2x32xf32, #tpu.memory_space<vmem>>, vector<1x2x32xf32>
    %197 = vector.shape_cast %196 : vector<1x2x32xf32> to vector<2x32xf32>
    %198 = vector.shape_cast %188 : vector<2x32xf32> to vector<1x2x32xf32>
    tpu.vector_store %arg10[%c0_62, %c0_63, %c0_64], %198 {strides = array<i32>} : memref<2x2x32xf32, #tpu.memory_space<vmem>>, vector<1x2x32xf32>,
    %c0_65 = arith.constant 0 : index
    %c0_66 = arith.constant 0 : index
    %199 = vector.load %arg11[%c0_65, %c0_66] : memref<16x32xbf16, #tpu.memory_space<vmem>>, vector<16x32xbf16>
    %c0_67 = arith.constant 0 : index
    %c0_68 = arith.constant 0 : index
    %c0_69 = arith.constant 0 : index
    %200 = vector.load %arg3[%c0_67, %c0_68, %c0_69] : memref<1x32x128xbf16, #tpu.memory_space<vmem>>, vector<1x32x128xbf16>
    %201 = vector.shape_cast %200 : vector<1x32x128xbf16> to vector<32x128xbf16>
    %cst_70 = arith.constant dense<0.000000e+00> : vector<16x128xf32>
    %202 = tpu.matmul %199, %201, %cst_70 {dimension_numbers = #tpu.dot_dimension_numbers<[1], [0], [0], [1], [0, 0, 1, 1], [], []>} : vector<16x32xbf16>, vector<32x128xbf16>, vector<16x128xf32> -> vector<16x128xf32>
    %c1 = arith.constant 1 : index
    %c0_71 = arith.constant 0 : index
    %c0_72 = arith.constant 0 : index
    %203 = vector.load %arg5[%c1, %c0_71, %c0_72] : memref<2x1x128xf32, #tpu.memory_space<vmem>>, vector<1x1x128xf32>
    %204 = vector.shape_cast %203 : vector<1x1x128xf32> to vector<1x128xf32>
    %205 = vector.broadcast %204 : vector<1x128xf32> to vector<16x128xf32>
    %206 = arith.addf %202, %205 : vector<16x128xf32>
    %c0_73 = arith.constant 0 : index
    %c0_74 = arith.constant 0 : index
    %207 = vector.load %arg12[%c0_73, %c0_74] : memref<16x128xf32, #tpu.memory_space<vmem>>, vector<16x128xf32>
    tpu.vector_store %arg12[%c0_73, %c0_74], %206 {strides = array<i32>} : memref<16x128xf32, #tpu.memory_space<vmem>>, vector<16x128xf32>,
    %c1_75 = arith.constant 1 : index
    %c0_76 = arith.constant 0 : index
    %c0_77 = arith.constant 0 : index
    %208 = vector.load %arg4[%c1_75, %c0_76, %c0_77] : memref<2x32x128xbf16, #tpu.memory_space<vmem>>, vector<1x32x128xbf16>
    %209 = vector.shape_cast %208 : vector<1x32x128xbf16> to vector<32x128xbf16>
    %c1_78 = arith.constant 1 : index
    %c0_79 = arith.constant 0 : index
    %c0_80 = arith.constant 0 : index
    %210 = vector.load %arg9[%c1_78, %c0_79, %c0_80] : memref<2x2x32xf32, #tpu.memory_space<vmem>>, vector<1x2x32xf32>
    %211 = vector.shape_cast %210 : vector<1x2x32xf32> to vector<2x32xf32>
    %c1_81 = arith.constant 1 : index
    %c0_82 = arith.constant 0 : index
    %c0_83 = arith.constant 0 : index
    %212 = vector.load %arg10[%c1_81, %c0_82, %c0_83] : memref<2x2x32xf32, #tpu.memory_space<vmem>>, vector<1x2x32xf32>
    %213 = vector.shape_cast %212 : vector<1x2x32xf32> to vector<2x32xf32>
    %c0_84 = arith.constant 0 : index
    %c0_85 = arith.constant 0 : index
    %214 = vector.load %arg12[%c0_84, %c0_85] : memref<16x128xf32, #tpu.memory_space<vmem>>, vector<2x128xf32>
    %215 = arith.truncf %211 : vector<2x32xf32> to vector<2x32xbf16>
    %cst_86 = arith.constant dense<0.000000e+00> : vector<2x128xf32>
    %216 = tpu.matmul %215, %209, %cst_86 {dimension_numbers = #tpu.dot_dimension_numbers<[1], [0], [0], [1], [0, 0, 1, 1], [], []>} : vector<2x32xbf16>, vector<32x128xbf16>, vector<2x128xf32> -> vector<2x128xf32>
    %217 = arith.addf %214, %216 : vector<2x128xf32>
    %218 = vector.extract_strided_slice %217 {offsets = [0, 0], sizes = [2, 96], strides = [1, 1]} : vector<2x128xf32> to vector<2x96xf32>
    %219 = arith.negf %218 : vector<2x96xf32>
    %220 = math.exp %219 : vector<2x96xf32>
    %cst_87 = arith.constant 1.000000e+00 : f32
    %221 = vector.broadcast %cst_87 : f32 to vector<2x96xf32>
    %222 = arith.addf %221, %220 : vector<2x96xf32>
    %223 = arith.divf %221, %222 : vector<2x96xf32>
    %224 = vector.extract_strided_slice %217 {offsets = [0, 96], sizes = [2, 32], strides = [1, 1]} : vector<2x128xf32> to vector<2x32xf32>
    %225 = math.tanh %224 : vector<2x32xf32>
    %226 = vector.extract_strided_slice %223 {offsets = [0, 0], sizes = [2, 32], strides = [1, 1]} : vector<2x96xf32> to vector<2x32xf32>
    %227 = vector.extract_strided_slice %223 {offsets = [0, 32], sizes = [2, 32], strides = [1, 1]} : vector<2x96xf32> to vector<2x32xf32>
    %228 = vector.extract_strided_slice %223 {offsets = [0, 64], sizes = [2, 32], strides = [1, 1]} : vector<2x96xf32> to vector<2x32xf32>
    %229 = arith.mulf %227, %213 : vector<2x32xf32>
    %230 = arith.mulf %226, %225 : vector<2x32xf32>
    %231 = arith.addf %229, %230 : vector<2x32xf32>
    %232 = math.tanh %231 : vector<2x32xf32>
    %233 = arith.mulf %228, %232 : vector<2x32xf32>
    %c0_88 = arith.constant 0 : index
    %c0_89 = arith.constant 0 : index
    %c0_90 = arith.constant 0 : index
    %234 = vector.load %arg8[%c0_88, %c0_89, %c0_90] : memref<2x8x32xf32, #tpu.memory_space<vmem>>, vector<2x1x32xf32>
    %235 = vector.shape_cast %234 : vector<2x1x32xf32> to vector<2x32xf32>
    %236 = vector.shape_cast %233 : vector<2x32xf32> to vector<2x1x32xf32>
    tpu.vector_store %arg8[%c0_88, %c0_89, %c0_90], %236 {strides = array<i32>} : memref<2x8x32xf32, #tpu.memory_space<vmem>>, vector<2x1x32xf32>,
    %c2_91 = arith.constant 2 : index
    %c0_92 = arith.constant 0 : index
    %237 = vector.load %arg12[%c2_91, %c0_92] : memref<16x128xf32, #tpu.memory_space<vmem>>, vector<2x128xf32>
    %238 = arith.truncf %233 : vector<2x32xf32> to vector<2x32xbf16>
    %cst_93 = arith.constant dense<0.000000e+00> : vector<2x128xf32>
    %239 = tpu.matmul %238, %209, %cst_93 {dimension_numbers = #tpu.dot_dimension_numbers<[1], [0], [0], [1], [0, 0, 1, 1], [], []>} : vector<2x32xbf16>, vector<32x128xbf16>, vector<2x128xf32> -> vector<2x128xf32>
    %240 = arith.addf %237, %239 : vector<2x128xf32>
    %241 = vector.extract_strided_slice %240 {offsets = [0, 0], sizes = [2, 96], strides = [1, 1]} : vector<2x128xf32> to vector<2x96xf32>
    %242 = arith.negf %241 : vector<2x96xf32>
    %243 = math.exp %242 : vector<2x96xf32>
    %cst_94 = arith.constant 1.000000e+00 : f32
    %244 = vector.broadcast %cst_94 : f32 to vector<2x96xf32>
    %245 = arith.addf %244, %243 : vector<2x96xf32>
    %246 = arith.divf %244, %245 : vector<2x96xf32>
    %247 = vector.extract_strided_slice %240 {offsets = [0, 96], sizes = [2, 32], strides = [1, 1]} : vector<2x128xf32> to vector<2x32xf32>
    %248 = math.tanh %247 : vector<2x32xf32>
    %249 = vector.extract_strided_slice %246 {offsets = [0, 0], sizes = [2, 32], strides = [1, 1]} : vector<2x96xf32> to vector<2x32xf32>
    %250 = vector.extract_strided_slice %246 {offsets = [0, 32], sizes = [2, 32], strides = [1, 1]} : vector<2x96xf32> to vector<2x32xf32>
    %251 = vector.extract_strided_slice %246 {offsets = [0, 64], sizes = [2, 32], strides = [1, 1]} : vector<2x96xf32> to vector<2x32xf32>
    %252 = arith.mulf %250, %231 : vector<2x32xf32>
    %253 = arith.mulf %249, %248 : vector<2x32xf32>
    %254 = arith.addf %252, %253 : vector<2x32xf32>
    %255 = math.tanh %254 : vector<2x32xf32>
    %256 = arith.mulf %251, %255 : vector<2x32xf32>
    %c0_95 = arith.constant 0 : index
    %c1_96 = arith.constant 1 : index
    %c0_97 = arith.constant 0 : index
    %257 = vector.load %arg8[%c0_95, %c1_96, %c0_97] : memref<2x8x32xf32, #tpu.memory_space<vmem>>, vector<2x1x32xf32>
    %258 = vector.shape_cast %257 : vector<2x1x32xf32> to vector<2x32xf32>
    %259 = vector.shape_cast %256 : vector<2x32xf32> to vector<2x1x32xf32>
    tpu.vector_store %arg8[%c0_95, %c1_96, %c0_97], %259 {strides = array<i32>} : memref<2x8x32xf32, #tpu.memory_space<vmem>>, vector<2x1x32xf32>,
    %c4_98 = arith.constant 4 : index
    %c0_99 = arith.constant 0 : index
    %260 = vector.load %arg12[%c4_98, %c0_99] : memref<16x128xf32, #tpu.memory_space<vmem>>, vector<2x128xf32>
    %261 = arith.truncf %256 : vector<2x32xf32> to vector<2x32xbf16>
    %cst_100 = arith.constant dense<0.000000e+00> : vector<2x128xf32>
    %262 = tpu.matmul %261, %209, %cst_100 {dimension_numbers = #tpu.dot_dimension_numbers<[1], [0], [0], [1], [0, 0, 1, 1], [], []>} : vector<2x32xbf16>, vector<32x128xbf16>, vector<2x128xf32> -> vector<2x128xf32>
    %263 = arith.addf %260, %262 : vector<2x128xf32>
    %264 = vector.extract_strided_slice %263 {offsets = [0, 0], sizes = [2, 96], strides = [1, 1]} : vector<2x128xf32> to vector<2x96xf32>
    %265 = arith.negf %264 : vector<2x96xf32>
    %266 = math.exp %265 : vector<2x96xf32>
    %cst_101 = arith.constant 1.000000e+00 : f32
    %267 = vector.broadcast %cst_101 : f32 to vector<2x96xf32>
    %268 = arith.addf %267, %266 : vector<2x96xf32>
    %269 = arith.divf %267, %268 : vector<2x96xf32>
    %270 = vector.extract_strided_slice %263 {offsets = [0, 96], sizes = [2, 32], strides = [1, 1]} : vector<2x128xf32> to vector<2x32xf32>
    %271 = math.tanh %270 : vector<2x32xf32>
    %272 = vector.extract_strided_slice %269 {offsets = [0, 0], sizes = [2, 32], strides = [1, 1]} : vector<2x96xf32> to vector<2x32xf32>
    %273 = vector.extract_strided_slice %269 {offsets = [0, 32], sizes = [2, 32], strides = [1, 1]} : vector<2x96xf32> to vector<2x32xf32>
    %274 = vector.extract_strided_slice %269 {offsets = [0, 64], sizes = [2, 32], strides = [1, 1]} : vector<2x96xf32> to vector<2x32xf32>
    %275 = arith.mulf %273, %254 : vector<2x32xf32>
    %276 = arith.mulf %272, %271 : vector<2x32xf32>
    %277 = arith.addf %275, %276 : vector<2x32xf32>
    %278 = math.tanh %277 : vector<2x32xf32>
    %279 = arith.mulf %274, %278 : vector<2x32xf32>
    %c0_102 = arith.constant 0 : index
    %c2_103 = arith.constant 2 : index
    %c0_104 = arith.constant 0 : index
    %280 = vector.load %arg8[%c0_102, %c2_103, %c0_104] : memref<2x8x32xf32, #tpu.memory_space<vmem>>, vector<2x1x32xf32>
    %281 = vector.shape_cast %280 : vector<2x1x32xf32> to vector<2x32xf32>
    %282 = vector.shape_cast %279 : vector<2x32xf32> to vector<2x1x32xf32>
    tpu.vector_store %arg8[%c0_102, %c2_103, %c0_104], %282 {strides = array<i32>} : memref<2x8x32xf32, #tpu.memory_space<vmem>>, vector<2x1x32xf32>,
    %c6_105 = arith.constant 6 : index
    %c0_106 = arith.constant 0 : index
    %283 = vector.load %arg12[%c6_105, %c0_106] : memref<16x128xf32, #tpu.memory_space<vmem>>, vector<2x128xf32>
    %284 = arith.truncf %279 : vector<2x32xf32> to vector<2x32xbf16>
    %cst_107 = arith.constant dense<0.000000e+00> : vector<2x128xf32>
    %285 = tpu.matmul %284, %209, %cst_107 {dimension_numbers = #tpu.dot_dimension_numbers<[1], [0], [0], [1], [0, 0, 1, 1], [], []>} : vector<2x32xbf16>, vector<32x128xbf16>, vector<2x128xf32> -> vector<2x128xf32>
    %286 = arith.addf %283, %285 : vector<2x128xf32>
    %287 = vector.extract_strided_slice %286 {offsets = [0, 0], sizes = [2, 96], strides = [1, 1]} : vector<2x128xf32> to vector<2x96xf32>
    %288 = arith.negf %287 : vector<2x96xf32>
    %289 = math.exp %288 : vector<2x96xf32>
    %cst_108 = arith.constant 1.000000e+00 : f32
    %290 = vector.broadcast %cst_108 : f32 to vector<2x96xf32>
    %291 = arith.addf %290, %289 : vector<2x96xf32>
    %292 = arith.divf %290, %291 : vector<2x96xf32>
    %293 = vector.extract_strided_slice %286 {offsets = [0, 96], sizes = [2, 32], strides = [1, 1]} : vector<2x128xf32> to vector<2x32xf32>
    %294 = math.tanh %293 : vector<2x32xf32>
    %295 = vector.extract_strided_slice %292 {offsets = [0, 0], sizes = [2, 32], strides = [1, 1]} : vector<2x96xf32> to vector<2x32xf32>
    %296 = vector.extract_strided_slice %292 {offsets = [0, 32], sizes = [2, 32], strides = [1, 1]} : vector<2x96xf32> to vector<2x32xf32>
    %297 = vector.extract_strided_slice %292 {offsets = [0, 64], sizes = [2, 32], strides = [1, 1]} : vector<2x96xf32> to vector<2x32xf32>
    %298 = arith.mulf %296, %277 : vector<2x32xf32>
    %299 = arith.mulf %295, %294 : vector<2x32xf32>
    %300 = arith.addf %298, %299 : vector<2x32xf32>
    %301 = math.tanh %300 : vector<2x32xf32>
    %302 = arith.mulf %297, %301 : vector<2x32xf32>
    %c0_109 = arith.constant 0 : index
    %c3 = arith.constant 3 : index
    %c0_110 = arith.constant 0 : index
    %303 = vector.load %arg8[%c0_109, %c3, %c0_110] : memref<2x8x32xf32, #tpu.memory_space<vmem>>, vector<2x1x32xf32>
    %304 = vector.shape_cast %303 : vector<2x1x32xf32> to vector<2x32xf32>
    %305 = vector.shape_cast %302 : vector<2x32xf32> to vector<2x1x32xf32>
    tpu.vector_store %arg8[%c0_109, %c3, %c0_110], %305 {strides = array<i32>} : memref<2x8x32xf32, #tpu.memory_space<vmem>>, vector<2x1x32xf32>,
    %c8_111 = arith.constant 8 : index
    %c0_112 = arith.constant 0 : index
    %306 = vector.load %arg12[%c8_111, %c0_112] : memref<16x128xf32, #tpu.memory_space<vmem>>, vector<2x128xf32>
    %307 = arith.truncf %302 : vector<2x32xf32> to vector<2x32xbf16>
    %cst_113 = arith.constant dense<0.000000e+00> : vector<2x128xf32>
    %308 = tpu.matmul %307, %209, %cst_113 {dimension_numbers = #tpu.dot_dimension_numbers<[1], [0], [0], [1], [0, 0, 1, 1], [], []>} : vector<2x32xbf16>, vector<32x128xbf16>, vector<2x128xf32> -> vector<2x128xf32>
    %309 = arith.addf %306, %308 : vector<2x128xf32>
    %310 = vector.extract_strided_slice %309 {offsets = [0, 0], sizes = [2, 96], strides = [1, 1]} : vector<2x128xf32> to vector<2x96xf32>
    %311 = arith.negf %310 : vector<2x96xf32>
    %312 = math.exp %311 : vector<2x96xf32>
    %cst_114 = arith.constant 1.000000e+00 : f32
    %313 = vector.broadcast %cst_114 : f32 to vector<2x96xf32>
    %314 = arith.addf %313, %312 : vector<2x96xf32>
    %315 = arith.divf %313, %314 : vector<2x96xf32>
    %316 = vector.extract_strided_slice %309 {offsets = [0, 96], sizes = [2, 32], strides = [1, 1]} : vector<2x128xf32> to vector<2x32xf32>
    %317 = math.tanh %316 : vector<2x32xf32>
    %318 = vector.extract_strided_slice %315 {offsets = [0, 0], sizes = [2, 32], strides = [1, 1]} : vector<2x96xf32> to vector<2x32xf32>
    %319 = vector.extract_strided_slice %315 {offsets = [0, 32], sizes = [2, 32], strides = [1, 1]} : vector<2x96xf32> to vector<2x32xf32>
    %320 = vector.extract_strided_slice %315 {offsets = [0, 64], sizes = [2, 32], strides = [1, 1]} : vector<2x96xf32> to vector<2x32xf32>
    %321 = arith.mulf %319, %300 : vector<2x32xf32>
    %322 = arith.mulf %318, %317 : vector<2x32xf32>
    %323 = arith.addf %321, %322 : vector<2x32xf32>
    %324 = math.tanh %323 : vector<2x32xf32>
    %325 = arith.mulf %320, %324 : vector<2x32xf32>
    %c0_115 = arith.constant 0 : index
    %c4_116 = arith.constant 4 : index
    %c0_117 = arith.constant 0 : index
    %326 = vector.load %arg8[%c0_115, %c4_116, %c0_117] : memref<2x8x32xf32, #tpu.memory_space<vmem>>, vector<2x1x32xf32>
    %327 = vector.shape_cast %326 : vector<2x1x32xf32> to vector<2x32xf32>
    %328 = vector.shape_cast %325 : vector<2x32xf32> to vector<2x1x32xf32>
    tpu.vector_store %arg8[%c0_115, %c4_116, %c0_117], %328 {strides = array<i32>} : memref<2x8x32xf32, #tpu.memory_space<vmem>>, vector<2x1x32xf32>,
    %c10_118 = arith.constant 10 : index
    %c0_119 = arith.constant 0 : index
    %329 = vector.load %arg12[%c10_118, %c0_119] : memref<16x128xf32, #tpu.memory_space<vmem>>, vector<2x128xf32>
    %330 = arith.truncf %325 : vector<2x32xf32> to vector<2x32xbf16>
    %cst_120 = arith.constant dense<0.000000e+00> : vector<2x128xf32>
    %331 = tpu.matmul %330, %209, %cst_120 {dimension_numbers = #tpu.dot_dimension_numbers<[1], [0], [0], [1], [0, 0, 1, 1], [], []>} : vector<2x32xbf16>, vector<32x128xbf16>, vector<2x128xf32> -> vector<2x128xf32>
    %332 = arith.addf %329, %331 : vector<2x128xf32>
    %333 = vector.extract_strided_slice %332 {offsets = [0, 0], sizes = [2, 96], strides = [1, 1]} : vector<2x128xf32> to vector<2x96xf32>
    %334 = arith.negf %333 : vector<2x96xf32>
    %335 = math.exp %334 : vector<2x96xf32>
    %cst_121 = arith.constant 1.000000e+00 : f32
    %336 = vector.broadcast %cst_121 : f32 to vector<2x96xf32>
    %337 = arith.addf %336, %335 : vector<2x96xf32>
    %338 = arith.divf %336, %337 : vector<2x96xf32>
    %339 = vector.extract_strided_slice %332 {offsets = [0, 96], sizes = [2, 32], strides = [1, 1]} : vector<2x128xf32> to vector<2x32xf32>
    %340 = math.tanh %339 : vector<2x32xf32>
    %341 = vector.extract_strided_slice %338 {offsets = [0, 0], sizes = [2, 32], strides = [1, 1]} : vector<2x96xf32> to vector<2x32xf32>
    %342 = vector.extract_strided_slice %338 {offsets = [0, 32], sizes = [2, 32], strides = [1, 1]} : vector<2x96xf32> to vector<2x32xf32>
    %343 = vector.extract_strided_slice %338 {offsets = [0, 64], sizes = [2, 32], strides = [1, 1]} : vector<2x96xf32> to vector<2x32xf32>
    %344 = arith.mulf %342, %323 : vector<2x32xf32>
    %345 = arith.mulf %341, %340 : vector<2x32xf32>
    %346 = arith.addf %344, %345 : vector<2x32xf32>
    %347 = math.tanh %346 : vector<2x32xf32>
    %348 = arith.mulf %343, %347 : vector<2x32xf32>
    %c0_122 = arith.constant 0 : index
    %c5 = arith.constant 5 : index
    %c0_123 = arith.constant 0 : index
    %349 = vector.load %arg8[%c0_122, %c5, %c0_123] : memref<2x8x32xf32, #tpu.memory_space<vmem>>, vector<2x1x32xf32>
    %350 = vector.shape_cast %349 : vector<2x1x32xf32> to vector<2x32xf32>
    %351 = vector.shape_cast %348 : vector<2x32xf32> to vector<2x1x32xf32>
    tpu.vector_store %arg8[%c0_122, %c5, %c0_123], %351 {strides = array<i32>} : memref<2x8x32xf32, #tpu.memory_space<vmem>>, vector<2x1x32xf32>,
    %c12_124 = arith.constant 12 : index
    %c0_125 = arith.constant 0 : index
    %352 = vector.load %arg12[%c12_124, %c0_125] : memref<16x128xf32, #tpu.memory_space<vmem>>, vector<2x128xf32>
    %353 = arith.truncf %348 : vector<2x32xf32> to vector<2x32xbf16>
    %cst_126 = arith.constant dense<0.000000e+00> : vector<2x128xf32>
    %354 = tpu.matmul %353, %209, %cst_126 {dimension_numbers = #tpu.dot_dimension_numbers<[1], [0], [0], [1], [0, 0, 1, 1], [], []>} : vector<2x32xbf16>, vector<32x128xbf16>, vector<2x128xf32> -> vector<2x128xf32>
    %355 = arith.addf %352, %354 : vector<2x128xf32>
    %356 = vector.extract_strided_slice %355 {offsets = [0, 0], sizes = [2, 96], strides = [1, 1]} : vector<2x128xf32> to vector<2x96xf32>
    %357 = arith.negf %356 : vector<2x96xf32>
    %358 = math.exp %357 : vector<2x96xf32>
    %cst_127 = arith.constant 1.000000e+00 : f32
    %359 = vector.broadcast %cst_127 : f32 to vector<2x96xf32>
    %360 = arith.addf %359, %358 : vector<2x96xf32>
    %361 = arith.divf %359, %360 : vector<2x96xf32>
    %362 = vector.extract_strided_slice %355 {offsets = [0, 96], sizes = [2, 32], strides = [1, 1]} : vector<2x128xf32> to vector<2x32xf32>
    %363 = math.tanh %362 : vector<2x32xf32>
    %364 = vector.extract_strided_slice %361 {offsets = [0, 0], sizes = [2, 32], strides = [1, 1]} : vector<2x96xf32> to vector<2x32xf32>
    %365 = vector.extract_strided_slice %361 {offsets = [0, 32], sizes = [2, 32], strides = [1, 1]} : vector<2x96xf32> to vector<2x32xf32>
    %366 = vector.extract_strided_slice %361 {offsets = [0, 64], sizes = [2, 32], strides = [1, 1]} : vector<2x96xf32> to vector<2x32xf32>
    %367 = arith.mulf %365, %346 : vector<2x32xf32>
    %368 = arith.mulf %364, %363 : vector<2x32xf32>
    %369 = arith.addf %367, %368 : vector<2x32xf32>
    %370 = math.tanh %369 : vector<2x32xf32>
    %371 = arith.mulf %366, %370 : vector<2x32xf32>
    %c0_128 = arith.constant 0 : index
    %c6_129 = arith.constant 6 : index
    %c0_130 = arith.constant 0 : index
    %372 = vector.load %arg8[%c0_128, %c6_129, %c0_130] : memref<2x8x32xf32, #tpu.memory_space<vmem>>, vector<2x1x32xf32>
    %373 = vector.shape_cast %372 : vector<2x1x32xf32> to vector<2x32xf32>
    %374 = vector.shape_cast %371 : vector<2x32xf32> to vector<2x1x32xf32>
    tpu.vector_store %arg8[%c0_128, %c6_129, %c0_130], %374 {strides = array<i32>} : memref<2x8x32xf32, #tpu.memory_space<vmem>>, vector<2x1x32xf32>,
    %c14_131 = arith.constant 14 : index
    %c0_132 = arith.constant 0 : index
    %375 = vector.load %arg12[%c14_131, %c0_132] : memref<16x128xf32, #tpu.memory_space<vmem>>, vector<2x128xf32>
    %376 = arith.truncf %371 : vector<2x32xf32> to vector<2x32xbf16>
    %cst_133 = arith.constant dense<0.000000e+00> : vector<2x128xf32>
    %377 = tpu.matmul %376, %209, %cst_133 {dimension_numbers = #tpu.dot_dimension_numbers<[1], [0], [0], [1], [0, 0, 1, 1], [], []>} : vector<2x32xbf16>, vector<32x128xbf16>, vector<2x128xf32> -> vector<2x128xf32>
    %378 = arith.addf %375, %377 : vector<2x128xf32>
    %379 = vector.extract_strided_slice %378 {offsets = [0, 0], sizes = [2, 96], strides = [1, 1]} : vector<2x128xf32> to vector<2x96xf32>
    %380 = arith.negf %379 : vector<2x96xf32>
    %381 = math.exp %380 : vector<2x96xf32>
    %cst_134 = arith.constant 1.000000e+00 : f32
    %382 = vector.broadcast %cst_134 : f32 to vector<2x96xf32>
    %383 = arith.addf %382, %381 : vector<2x96xf32>
    %384 = arith.divf %382, %383 : vector<2x96xf32>
    %385 = vector.extract_strided_slice %378 {offsets = [0, 96], sizes = [2, 32], strides = [1, 1]} : vector<2x128xf32> to vector<2x32xf32>
    %386 = math.tanh %385 : vector<2x32xf32>
    %387 = vector.extract_strided_slice %384 {offsets = [0, 0], sizes = [2, 32], strides = [1, 1]} : vector<2x96xf32> to vector<2x32xf32>
    %388 = vector.extract_strided_slice %384 {offsets = [0, 32], sizes = [2, 32], strides = [1, 1]} : vector<2x96xf32> to vector<2x32xf32>
    %389 = vector.extract_strided_slice %384 {offsets = [0, 64], sizes = [2, 32], strides = [1, 1]} : vector<2x96xf32> to vector<2x32xf32>
    %390 = arith.mulf %388, %369 : vector<2x32xf32>
    %391 = arith.mulf %387, %386 : vector<2x32xf32>
    %392 = arith.addf %390, %391 : vector<2x32xf32>
    %393 = math.tanh %392 : vector<2x32xf32>
    %394 = arith.mulf %389, %393 : vector<2x32xf32>
    %c0_135 = arith.constant 0 : index
    %c7 = arith.constant 7 : index
    %c0_136 = arith.constant 0 : index
    %395 = vector.load %arg8[%c0_135, %c7, %c0_136] : memref<2x8x32xf32, #tpu.memory_space<vmem>>, vector<2x1x32xf32>
    %396 = vector.shape_cast %395 : vector<2x1x32xf32> to vector<2x32xf32>
    %397 = vector.shape_cast %394 : vector<2x32xf32> to vector<2x1x32xf32>
    tpu.vector_store %arg8[%c0_135, %c7, %c0_136], %397 {strides = array<i32>} : memref<2x8x32xf32, #tpu.memory_space<vmem>>, vector<2x1x32xf32>,
    %c1_137 = arith.constant 1 : index
    %c0_138 = arith.constant 0 : index
    %c0_139 = arith.constant 0 : index
    %398 = vector.load %arg9[%c1_137, %c0_138, %c0_139] : memref<2x2x32xf32, #tpu.memory_space<vmem>>, vector<1x2x32xf32>
    %399 = vector.shape_cast %398 : vector<1x2x32xf32> to vector<2x32xf32>
    %400 = vector.shape_cast %394 : vector<2x32xf32> to vector<1x2x32xf32>
    tpu.vector_store %arg9[%c1_137, %c0_138, %c0_139], %400 {strides = array<i32>} : memref<2x2x32xf32, #tpu.memory_space<vmem>>, vector<1x2x32xf32>,
    %c1_140 = arith.constant 1 : index
    %c0_141 = arith.constant 0 : index
    %c0_142 = arith.constant 0 : index
    %401 = vector.load %arg10[%c1_140, %c0_141, %c0_142] : memref<2x2x32xf32, #tpu.memory_space<vmem>>, vector<1x2x32xf32>
    %402 = vector.shape_cast %401 : vector<1x2x32xf32> to vector<2x32xf32>
    %403 = vector.shape_cast %392 : vector<2x32xf32> to vector<1x2x32xf32>
    tpu.vector_store %arg10[%c1_140, %c0_141, %c0_142], %403 {strides = array<i32>} : memref<2x2x32xf32, #tpu.memory_space<vmem>>, vector<1x2x32xf32>,
    return
  }
  func.func @transform_0(%arg0: i32) -> (i32, i32) {
    %c0_i32 = arith.constant 0 : i32
    %c0_i32_0 = arith.constant 0 : i32
    return %arg0, %c0_i32 : i32, i32
  }
  func.func @transform_1(%arg0: i32) -> (i32, i32) {
    %c0_i32 = arith.constant 0 : i32
    %c0_i32_0 = arith.constant 0 : i32
    %c0_i32_1 = arith.constant 0 : i32
    return %c0_i32, %c0_i32_0 : i32, i32
  }
  func.func @transform_2(%arg0: i32) -> (i32, i32, i32) {
    %c0_i32 = arith.constant 0 : i32
    %c0_i32_0 = arith.constant 0 : i32
    %c0_i32_1 = arith.constant 0 : i32
    %c0_i32_2 = arith.constant 0 : i32
    return %c0_i32, %c0_i32_0, %c0_i32_1 : i32, i32, i32
  }
  func.func @transform_3(%arg0: i32) -> (i32, i32, i32) {
    %c0_i32 = arith.constant 0 : i32
    %c0_i32_0 = arith.constant 0 : i32
    %c0_i32_1 = arith.constant 0 : i32
    %c0_i32_2 = arith.constant 0 : i32
    return %c0_i32, %c0_i32_0, %c0_i32_1 : i32, i32, i32
  }
  func.func @transform_4(%arg0: i32) -> (i32, i32, i32) {
    %c0_i32 = arith.constant 0 : i32
    %c0_i32_0 = arith.constant 0 : i32
    %c0_i32_1 = arith.constant 0 : i32
    %c0_i32_2 = arith.constant 0 : i32
    return %c0_i32, %c0_i32_0, %c0_i32_1 : i32, i32, i32
  }
  func.func @transform_5(%arg0: i32) -> (i32, i32, i32) {
    %c0_i32 = arith.constant 0 : i32
    %c0_i32_0 = arith.constant 0 : i32
    %c0_i32_1 = arith.constant 0 : i32
    %c0_i32_2 = arith.constant 0 : i32
    return %c0_i32, %c0_i32_0, %c0_i32_1 : i32, i32, i32
  }
  func.func @transform_6(%arg0: i32) -> (i32, i32, i32) {
    %c0_i32 = arith.constant 0 : i32
    %c0_i32_0 = arith.constant 0 : i32
    %c0_i32_1 = arith.constant 0 : i32
    %c0_i32_2 = arith.constant 0 : i32
    return %c0_i32, %c0_i32_0, %c0_i32_1 : i32, i32, i32
  }
  func.func @transform_7(%arg0: i32) -> (i32, i32, i32) {
    %c0_i32 = arith.constant 0 : i32
    %c0_i32_0 = arith.constant 0 : i32
    %c0_i32_1 = arith.constant 0 : i32
    return %c0_i32, %arg0, %c0_i32_0 : i32, i32, i32
  }
}

</mosaic_0001>

<bundles_post_ra>
// kernel: lstm_forward.1
= control target key start
LH: loop header
LB: loop body
LE: loop exit
PB: predicated region body
PF: predicated region fallthrough
CT: control target
= control target key end

     0   :  { %vm60_vm0 = vcmask 1041408   ;;  %v2229_v2 = vmov 0.0   ;;  %vm2230_vm1 = vmmov 0   ;;  %vm56_vm2 = vcmask 31744   ;;  %s2691_s0 = inlined_call_operand.vmem [shape: bf16[16,4], index: 0, kind: input, shape index: {}]   ;;  %s2692_s1 = inlined_call_operand.vmem [shape: bf16[4,128], index: 1, kind: input, shape index: {}]   ;;  %s2693_s2 = inlined_call_operand.vmem [shape: bf16[1,32,128], index: 2, kind: input, shape index: {}]   ;;  %s2694_s3 = inlined_call_operand.vmem [shape: bf16[2,32,128], index: 3, kind: input, shape index: {}]   ;;  %s2695_s4 = inlined_call_operand.vmem [shape: f32[2,1,128], index: 4, kind: input, shape index: {}]   ;;  %s2696_s5 = inlined_call_operand.vmem [shape: f32[2,2,32], index: 5, kind: input, shape index: {}]   ;;  %s2697_s6 = inlined_call_operand.vmem [shape: f32[2,2,32], index: 6, kind: input, shape index: {}]   ;;  %s2698_s7 = inlined_call_operand.hbm [shape: f32[2,8,32], index: 7, kind: output, shape index: {}]  }
   0x1   :  { %v43_v0 = vld [vmem:[%s2692_s1] sm:$0x3]  ;;  %v2284_v1 = vld [vmem:[%s2694_s3 + $0x8] sm:$0xff]   ;;  %1920 = vmatprep.subr.bf16.mxu0 %v2229_v2  ;;  %1926 = vmatprep.subr.bf16.mxu1 %v2229_v2  ;;  %vm34_vm3 = vcmask 254976  }
   0x2   :  { %v62_v3 = vsel %vm60_vm0, %v43_v0, 0  ;;  %v2072_v4 = vld [vmem:[%s2691_s0] sm:$0xff]   ;;  %1922 = vmatprep.mubr.msk.bf16.mxu0 %vm2230_vm1, %v2229_v2  ;;  %1927 = vmatpush3.bf16.msra.mxu1 %v2284_v1 }
   0x3   :  { %1921 = vmatpush3.bf16.msra.mxu0 %v62_v3  ;;  %v2296_v5 = vld [vmem:[%s2694_s3] sm:$0xff]   ;;  %1930 = vmatprep.mubr.msk.bf16.mxu1 %vm2230_vm1, %v2229_v2 }
   0x4   :  { %v32_v6 = vld [vmem:[%s2696_s5] sm:$0x3]  ;;  %1928 = vmatprep.subr.bf16.mxu1 %v2229_v2  ;;  %1934 = vmatprep.subr.bf16.mxu0 %v2229_v2 }
   0x5   :  { %35 = vst.msk [vmem:[#allocation2] sm:$0x3] %vm34_vm3, %v32_v6 }
   0x6   :  { %1923 = vmatmul.mubr.msk.bf16.vlgmr.msra.gmra.mxu0 %vm56_vm2, %v2072_v4  ;;  %1929 = vmatpush3.bf16.msra.mxu1 %v2296_v5 }
   0x7   :  { %1935 = vmatpush3.bf16.msra.mxu0 %v2284_v1  ;;  %1938 = vmatprep.mubr.msk.bf16.mxu0 %vm2230_vm1, %v2229_v2 }
   0x8   :  { %1936 = vmatprep.subr.bf16.mxu0 %v2229_v2 }
   0x9   :  { %12 = vsyncpa [#allocation7], 0  ;;  %1942 = vmatprep.subr.bf16.mxu1 %v2229_v2  ;;  %vm127_vm4 = vcmask 261120   ;;  %v37_v9 = vld [vmem:[%s2697_s6] sm:$0x3]  ;;  %s2231_s13 = smov 32  }
   0xa   :  { %39 = vst.msk [vmem:[#allocation3] sm:$0x3] %vm34_vm3, %v37_v9  ;;  %v1802_v10 = vld [vmem:[%s2695_s4] ss:$0 sm:$0xff]  ;;  %s2232_s14 = smov 64   ;;  %vm207_vm5 = vcmask 253952  }
   0xb   :  { %1937 = vmatpush3.bf16.msra.mxu0 %v2296_v5  ;;  %vm369_vm6 = vcmask 256002   ;;  %vm288_vm7 = vcmask 254977   ;;  %vm450_vm8 = vcmask 257027  }
   0xc   :  { %1950 = vmatprep.subr.bf16.mxu0 %v2229_v2  ;;  %v111_v7 = vld [vmem:[#allocation2] sm:$0x3] }
   0xd   :  { %v114_v8 = vpack.c.bf16 %v111_v7, %v111_v7 }
   0xf   :  { %1931 = vmatmul.mubr.msk.bf16.vlgmr.msra.gmra.mxu1 %vm127_vm4, %v114_v8 }
  0x10   :  { %1943 = vmatpush3.bf16.msra.mxu1 %v2284_v1  ;;  %1946 = vmatprep.mubr.msk.bf16.mxu1 %vm2230_vm1, %v2229_v2 }
  0x11   :  { %1944 = vmatprep.subr.bf16.mxu1 %v2229_v2  ;;  %v112_v24 = vld [vmem:[#allocation3] sm:$0x3] }
  0x14   :  { %1945 = vmatpush3.bf16.msra.mxu1 %v2296_v5 }
  0x15   :  { %1958 = vmatprep.subr.bf16.mxu1 %v2229_v2 }
  0xc6   :  { %v98_v11 = vpop.f32.mrf.mxu0 }
  0xc7   :  { %v99_v12 = vadd.f32 %v1802_v10, %v98_v11 }
  0xc8   :  { %v1924_v13 = vpop.f32.mrf.mxu0 }
  0xc9   :  { %105 = vst [vmem:[#allocation5] sm:$0xff] %v99_v12 }
  0xca   :  { %v101_v14 = vpop.f32.mrf.mxu0 }
  0xcb   :  { %v102_v15 = vadd.f32 %v1802_v10, %v101_v14 }
  0xcc   :  { %v1925_v16 = vpop.f32.mrf.mxu0 }
  0xcd   :  { %106 = vst [vmem:[#allocation5 + $0x8] sm:$0xff] %v102_v15 }
  0xcf   :  { %v165_v18 = vpop.f32.mrf.mxu1 }
  0xd0   :  { %v113_v17 = vld [vmem:[#allocation5] sm:$0x3]  ;;  %v209_v40 = vld [vmem:[#allocation5 + $0x2] sm:$0x3]  ;;  %v290_v61 = vld [vmem:[#allocation5 + $0x4] sm:$0x3] }
  0xd1   :  { %v171_v19 = vadd.f32 %v165_v18, %v113_v17  ;;  %v1932_v20 = vpop.f32.mrf.mxu1 }
  0xd3   :  { %2079 = vtanh.f32 %v171_v19  ;;  %v168_v21 = vpop.f32.mrf.mxu1  ;;  %v1808_v25 = vmul.f32 -1.442695, %v171_v19 }
  0xd4   :  { %v371_v21 = vld [vmem:[#allocation5 + $0x6] sm:$0x3] }
  0xd5   :  { %v1933_v22 = vpop.f32.mrf.mxu1  ;;  %2081 = vpow2.f32 %v1808_v25 }
  0xe0   :  { %v2080_v23 = vpop.eup %2079 }
  0xe1   :  { %185 = vrot.lane.b32.xlu0 %v2080_v23, %s2231_s13 }
  0xe2   :  { %v2082_v26 = vpop.eup %2081 }
  0xe3   :  { %v175_v27 = vadd.f32 1.0, %v2082_v26 }
  0xe5   :  { %180 = vrot.lane.b32.xlu0 %v112_v24, %s2231_s13  ;;  %2083 = vrcp.f32 %v175_v27 }
  0xf2   :  { %v2084_v28 = vpop.eup %2083 }
 0x153   :  { %v186_v29 = vpop.permute.xlu0 %185 }
 0x154   :  { %v188_v30 = vmul.f32 %v2084_v28, %v186_v29 }
 0x156   :  { %190 = vrot.lane.b32.xlu1 %v188_v30, %s2231_s13 }
 0x157   :  { %v181_v31 = vpop.permute.xlu0 %180 }
 0x158   :  { %v183_v32 = vmul.f32 %v2084_v28, %v181_v31 }
 0x1c8   :  { %v191_v33 = vpop.permute.xlu1 %190 }
 0x1c9   :  { %v193_v34 = vadd.f32 %v191_v33, %v183_v32 }
 0x1cb   :  { %2085 = vtanh.f32 %v193_v34 }
 0x1d8   :  { %v2086_v35 = vpop.eup %2085 }
 0x1d9   :  { %196 = vrot.lane.b32.xlu1 %v2086_v35, %s2231_s13 }
 0x24b   :  { %v197_v36 = vpop.permute.xlu1 %196 }
 0x24c   :  { %v199_v37 = vmul.f32 %v2084_v28, %v197_v36 }
 0x24e   :  { %v2333_v38 = vpack.c.bf16 %v199_v37, %v199_v37 }
 0x250   :  { %210 = vrot.lane.b32.xlu0 %v2333_v38, %s2232_s14 }
 0x2c2   :  { %v211_v39 = vpop.permute.xlu0 %210 }
 0x2c3   :  { %1939 = vmatmul.mubr.msk.bf16.vlgmr.msra.gmra.mxu0 %vm127_vm4, %v211_v39 }
 0x2c4   :  { %1951 = vmatpush3.bf16.msra.mxu0 %v2284_v1  ;;  %1954 = vmatprep.mubr.msk.bf16.mxu0 %vm2230_vm1, %v2229_v2 }
 0x2c5   :  { %1952 = vmatprep.subr.bf16.mxu0 %v2229_v2 }
 0x2c8   :  { %1953 = vmatpush3.bf16.msra.mxu0 %v2296_v5 }
 0x2c9   :  { %1966 = vmatprep.subr.bf16.mxu0 %v2229_v2 }
 0x383   :  { %v249_v41 = vpop.f32.mrf.mxu0 }
 0x384   :  { %v255_v42 = vadd.f32 %v249_v41, %v209_v40 }
 0x385   :  { %v1940_v43 = vpop.f32.mrf.mxu0 }
 0x386   :  { %2087 = vtanh.f32 %v255_v42  ;;  %v1811_v47 = vmul.f32 -1.442695, %v255_v42  ;;  %v452_v43 = vld [vmem:[#allocation5 + $0x8] sm:$0x3] }
 0x387   :  { %v252_v44 = vpop.f32.mrf.mxu0 }
 0x388   :  { %2089 = vpow2.f32 %v1811_v47 }
 0x389   :  { %v1941_v45 = vpop.f32.mrf.mxu0 }
 0x393   :  { %v2088_v46 = vpop.eup %2087 }
 0x394   :  { %265 = vrot.lane.b32.xlu1 %v2088_v46, %s2231_s13 }
 0x395   :  { %v2090_v48 = vpop.eup %2089 }
 0x396   :  { %v259_v49 = vadd.f32 1.0, %v2090_v48 }
 0x398   :  { %2091 = vrcp.f32 %v259_v49 }
 0x3a5   :  { %v2092_v50 = vpop.eup %2091 }
 0x3a6   :  { %v263_v53 = vmul.f32 %v2092_v50, %v193_v34 }
 0x406   :  { %v266_v51 = vpop.permute.xlu1 %265 }
 0x407   :  { %v268_v52 = vmul.f32 %v2092_v50, %v266_v51 }
 0x409   :  { %270 = vrot.lane.b32.xlu0 %v268_v52, %s2231_s13 }
 0x47b   :  { %v271_v54 = vpop.permute.xlu0 %270 }
 0x47c   :  { %v273_v55 = vadd.f32 %v271_v54, %v263_v53 }
 0x47e   :  { %2093 = vtanh.f32 %v273_v55 }
 0x48b   :  { %v2094_v56 = vpop.eup %2093 }
 0x48c   :  { %276 = vrot.lane.b32.xlu1 %v2094_v56, %s2231_s13 }
 0x4fe   :  { %v277_v57 = vpop.permute.xlu1 %276 }
 0x4ff   :  { %v279_v58 = vmul.f32 %v2092_v50, %v277_v57 }
 0x501   :  { %v2347_v59 = vpack.c.bf16 %v279_v58, %v279_v58 }
 0x503   :  { %291 = vrot.lane.b32.xlu0 %v2347_v59, %s2232_s14 }
 0x575   :  { %v292_v60 = vpop.permute.xlu0 %291 }
 0x576   :  { %1947 = vmatmul.mubr.msk.bf16.vlgmr.msra.gmra.mxu1 %vm127_vm4, %v292_v60 }
 0x577   :  { %1959 = vmatpush3.bf16.msra.mxu1 %v2284_v1  ;;  %1962 = vmatprep.mubr.msk.bf16.mxu1 %vm2230_vm1, %v2229_v2 }
 0x578   :  { %1960 = vmatprep.subr.bf16.mxu1 %v2229_v2 }
 0x57b   :  { %1961 = vmatpush3.bf16.msra.mxu1 %v2296_v5 }
 0x57c   :  { %1974 = vmatprep.subr.bf16.mxu1 %v2229_v2 }
 0x636   :  { %v330_v62 = vpop.f32.mrf.mxu1 }
 0x637   :  { %v336_v63 = vadd.f32 %v330_v62, %v290_v61 }
 0x638   :  { %v1948_v0 = vpop.f32.mrf.mxu1 }
 0x639   :  { %2095 = vtanh.f32 %v336_v63  ;;  %v1814_v7 = vmul.f32 -1.442695, %v336_v63 }
 0x63a   :  { %v333_v3 = vpop.f32.mrf.mxu1 }
 0x63b   :  { %2097 = vpow2.f32 %v1814_v7  ;;  %v531_v3 = vld [vmem:[#allocation5 + $0xa] sm:$0x3] }
 0x63c   :  { %v1949_v4 = vpop.f32.mrf.mxu1 }
 0x646   :  { %v2096_v6 = vpop.eup %2095 }
 0x647   :  { %346 = vrot.lane.b32.xlu1 %v2096_v6, %s2231_s13 }
 0x648   :  { %v2098_v8 = vpop.eup %2097 }
 0x649   :  { %v340_v9 = vadd.f32 1.0, %v2098_v8 }
 0x64b   :  { %2099 = vrcp.f32 %v340_v9 }
 0x658   :  { %v2100_v10 = vpop.eup %2099 }
 0x659   :  { %v344_v13 = vmul.f32 %v2100_v10, %v273_v55 }
 0x6b9   :  { %v347_v11 = vpop.permute.xlu1 %346 }
 0x6ba   :  { %v349_v12 = vmul.f32 %v2100_v10, %v347_v11 }
 0x6bc   :  { %351 = vrot.lane.b32.xlu0 %v349_v12, %s2231_s13 }
 0x72e   :  { %v352_v14 = vpop.permute.xlu0 %351 }
 0x72f   :  { %v354_v15 = vadd.f32 %v352_v14, %v344_v13 }
 0x731   :  { %2101 = vtanh.f32 %v354_v15 }
 0x73e   :  { %v2102_v16 = vpop.eup %2101 }
 0x73f   :  { %357 = vrot.lane.b32.xlu1 %v2102_v16, %s2231_s13 }
 0x7b1   :  { %v358_v17 = vpop.permute.xlu1 %357 }
 0x7b2   :  { %v360_v18 = vmul.f32 %v2100_v10, %v358_v17 }
 0x7b4   :  { %v2361_v19 = vpack.c.bf16 %v360_v18, %v360_v18 }
 0x7b6   :  { %372 = vrot.lane.b32.xlu0 %v2361_v19, %s2232_s14 }
 0x828   :  { %v373_v20 = vpop.permute.xlu0 %372 }
 0x829   :  { %1955 = vmatmul.mubr.msk.bf16.vlgmr.msra.gmra.mxu0 %vm127_vm4, %v373_v20 }
 0x82a   :  { %1967 = vmatpush3.bf16.msra.mxu0 %v2284_v1  ;;  %1970 = vmatprep.mubr.msk.bf16.mxu0 %vm2230_vm1, %v2229_v2 }
 0x82b   :  { %1968 = vmatprep.subr.bf16.mxu0 %v2229_v2 }
 0x82e   :  { %1969 = vmatpush3.bf16.msra.mxu0 %v2296_v5 }
 0x82f   :  { %1982 = vmatprep.subr.bf16.mxu0 %v2229_v2 }
 0x8e9   :  { %v411_v22 = vpop.f32.mrf.mxu0 }
 0x8ea   :  { %v417_v23 = vadd.f32 %v411_v22, %v371_v21 }
 0x8eb   :  { %v1956_v24 = vpop.f32.mrf.mxu0 }
 0x8ec   :  { %2103 = vtanh.f32 %v417_v23  ;;  %v1817_v28 = vmul.f32 -1.442695, %v417_v23  ;;  %v611_v24 = vld [vmem:[#allocation5 + $0xc] sm:$0x3] }
 0x8ed   :  { %v414_v25 = vpop.f32.mrf.mxu0 }
 0x8ee   :  { %2105 = vpow2.f32 %v1817_v28 }
 0x8ef   :  { %v1957_v26 = vpop.f32.mrf.mxu0 }
 0x8f9   :  { %v2104_v27 = vpop.eup %2103 }
 0x8fa   :  { %427 = vrot.lane.b32.xlu1 %v2104_v27, %s2231_s13 }
 0x8fb   :  { %v2106_v29 = vpop.eup %2105 }
 0x8fc   :  { %v421_v30 = vadd.f32 1.0, %v2106_v29 }
 0x8fe   :  { %2107 = vrcp.f32 %v421_v30 }
 0x90b   :  { %v2108_v31 = vpop.eup %2107 }
 0x90c   :  { %v425_v34 = vmul.f32 %v2108_v31, %v354_v15 }
 0x96c   :  { %v428_v32 = vpop.permute.xlu1 %427 }
 0x96d   :  { %v430_v33 = vmul.f32 %v2108_v31, %v428_v32 }
 0x96f   :  { %432 = vrot.lane.b32.xlu0 %v430_v33, %s2231_s13 }
 0x9e1   :  { %v433_v35 = vpop.permute.xlu0 %432 }
 0x9e2   :  { %v435_v36 = vadd.f32 %v433_v35, %v425_v34 }
 0x9e4   :  { %2109 = vtanh.f32 %v435_v36 }
 0x9f1   :  { %v2110_v37 = vpop.eup %2109 }
 0x9f2   :  { %438 = vrot.lane.b32.xlu1 %v2110_v37, %s2231_s13 }
 0xa64   :  { %v439_v39 = vpop.permute.xlu1 %438 }
 0xa65   :  { %v441_v40 = vmul.f32 %v2108_v31, %v439_v39 }
 0xa67   :  { %v2375_v41 = vpack.c.bf16 %v441_v40, %v441_v40 }
 0xa69   :  { %453 = vrot.lane.b32.xlu0 %v2375_v41, %s2232_s14 }
 0xadb   :  { %v454_v42 = vpop.permute.xlu0 %453 }
 0xadc   :  { %1963 = vmatmul.mubr.msk.bf16.vlgmr.msra.gmra.mxu1 %vm127_vm4, %v454_v42 }
 0xadd   :  { %1975 = vmatpush3.bf16.msra.mxu1 %v2284_v1  ;;  %1978 = vmatprep.mubr.msk.bf16.mxu1 %vm2230_vm1, %v2229_v2 }
 0xade   :  { %1976 = vmatprep.subr.bf16.mxu1 %v2229_v2 }
 0xae1   :  { %1977 = vmatpush3.bf16.msra.mxu1 %v2296_v5 }
 0xae2   :  { %1990 = vmatprep.subr.bf16.mxu1 %v2229_v2 }
 0xb9c   :  { %v492_v44 = vpop.f32.mrf.mxu1 }
 0xb9d   :  { %v498_v45 = vadd.f32 %v492_v44, %v452_v43 }
 0xb9e   :  { %v1964_v46 = vpop.f32.mrf.mxu1 }
 0xb9f   :  { %2111 = vtanh.f32 %v498_v45  ;;  %v1820_v50 = vmul.f32 -1.442695, %v498_v45 }
 0xba0   :  { %v495_v47 = vpop.f32.mrf.mxu1 }
 0xba1   :  { %2113 = vpow2.f32 %v1820_v50  ;;  %v691_v47 = vld [vmem:[#allocation5 + $0xe] sm:$0x3] }
 0xba2   :  { %v1965_v48 = vpop.f32.mrf.mxu1 }
 0xbac   :  { %v2112_v49 = vpop.eup %2111 }
 0xbad   :  { %508 = vrot.lane.b32.xlu1 %v2112_v49, %s2231_s13 }
 0xbae   :  { %v2114_v51 = vpop.eup %2113 }
 0xbaf   :  { %v502_v52 = vadd.f32 1.0, %v2114_v51 }
 0xbb1   :  { %2115 = vrcp.f32 %v502_v52 }
 0xbbe   :  { %v2116_v53 = vpop.eup %2115 }
 0xbbf   :  { %v506_v56 = vmul.f32 %v2116_v53, %v435_v36 }
 0xc1f   :  { %v509_v54 = vpop.permute.xlu1 %508 }
 0xc20   :  { %v511_v55 = vmul.f32 %v2116_v53, %v509_v54 }
 0xc22   :  { %513 = vrot.lane.b32.xlu0 %v511_v55, %s2231_s13 }
 0xc94   :  { %v514_v57 = vpop.permute.xlu0 %513 }
 0xc95   :  { %v516_v58 = vadd.f32 %v514_v57, %v506_v56 }
 0xc97   :  { %2117 = vtanh.f32 %v516_v58 }
 0xca4   :  { %v2118_v60 = vpop.eup %2117 }
 0xca5   :  { %519 = vrot.lane.b32.xlu1 %v2118_v60, %s2231_s13 }
 0xd17   :  { %v520_v61 = vpop.permute.xlu1 %519 }
 0xd18   :  { %v522_v62 = vmul.f32 %v2116_v53, %v520_v61  ;;  %v365_v61 = vrot.slane %v2361_v19, 6 }
 0xd1a   :  { %v2389_v63 = vpack.c.bf16 %v522_v62, %v522_v62 }
 0xd1c   :  { %532 = vrot.lane.b32.xlu0 %v2389_v63, %s2232_s14 }
 0xd8e   :  { %v533_v0 = vpop.permute.xlu0 %532 }
 0xd8f   :  { %1971 = vmatmul.mubr.msk.bf16.vlgmr.msra.gmra.mxu0 %vm127_vm4, %v533_v0 }
 0xd90   :  { %1983 = vmatpush3.bf16.msra.mxu0 %v2284_v1  ;;  %1986 = vmatprep.mubr.msk.bf16.mxu0 %vm2230_vm1, %v2229_v2 }
 0xd91   :  { %1984 = vmatprep.subr.bf16.mxu0 %v2229_v2 }
 0xd94   :  { %1985 = vmatpush3.bf16.msra.mxu0 %v2296_v5 }
 0xd95   :  { %1998 = vmatprep.subr.bf16.mxu0 %v2229_v2 }
 0xe4f   :  { %v571_v4 = vpop.f32.mrf.mxu0 }
 0xe50   :  { %v577_v6 = vadd.f32 %v571_v4, %v531_v3 }
 0xe51   :  { %v1972_v7 = vpop.f32.mrf.mxu0 }
 0xe52   :  { %2119 = vtanh.f32 %v577_v6  ;;  %v1823_v1 = vmul.f32 -1.442695, %v577_v6 }
 0xe53   :  { %v574_v8 = vpop.f32.mrf.mxu0 }
 0xe54   :  { %2121 = vpow2.f32 %v1823_v1  ;;  %v284_v8 = vrot.slane %v2347_v59, 7  ;;  %v2074_v1 = vld [vmem:[%s2693_s2 + $0x8] sm:$0xff]   ;;  %v2075_v59 = vld [vmem:[%s2693_s2] sm:$0xff]  }
 0xe55   :  { %v1973_v9 = vpop.f32.mrf.mxu0 }
 0xe56   :  { %v446_v9 = vrot.slane %v2375_v41, 5 }
 0xe5f   :  { %v2120_v10 = vpop.eup %2119 }
 0xe60   :  { %587 = vrot.lane.b32.xlu1 %v2120_v10, %s2231_s13 }
 0xe61   :  { %v2122_v11 = vpop.eup %2121 }
 0xe62   :  { %v581_v12 = vadd.f32 1.0, %v2122_v11  ;;  %v2444_v11 = vld [vmem:[%s2694_s3 + $0x18] sm:$0xff]  }
 0xe64   :  { %2123 = vrcp.f32 %v581_v12  ;;  %v33_v12 = vld [vmem:[%s2696_s5 + $0x2] sm:$0x3] }
 0xe65   :  { %36 = vst.msk [vmem:[#allocation2 + $0x2] sm:$0x3] %vm34_vm3, %v33_v12 }
 0xe71   :  { %v2124_v13 = vpop.eup %2123 }
 0xe72   :  { %v585_v15 = vmul.f32 %v2124_v13, %v516_v58 }
 0xed2   :  { %v588_v14 = vpop.permute.xlu1 %587 }
 0xed3   :  { %v590_v5 = vmul.f32 %v2124_v13, %v588_v14 }
 0xed5   :  { %592 = vrot.lane.b32.xlu0 %v590_v5, %s2231_s13  ;;  %v2464_v5 = vld [vmem:[%s2694_s3 + $0x10] sm:$0xff]  }
 0xf47   :  { %v593_v16 = vpop.permute.xlu0 %592 }
 0xf48   :  { %v595_v17 = vadd.f32 %v593_v16, %v585_v15  ;;  %v38_v15 = vld [vmem:[%s2697_s6 + $0x2] sm:$0x3]  ;;  %s2235_s6 = smov [#allocation6]  }
 0xf49   :  { %40 = vst.msk [vmem:[#allocation3 + $0x2] sm:$0x3] %vm34_vm3, %v38_v15  ;;  %s1791_s26 = sshll.u32 %s2235_s6, 4  ;;  %s1792_s26 = int_to_ptr.vmem [resolvable:$true] %s1791_s26 }
 0xf4a   :  { %2125 = vtanh.f32 %v595_v17  ;;  %s2207_s27 = scalar_lea.vmem %s1792_s26, 256  ;;  %p2212_p1 = scmp.lt.s32.totalorder %s1792_s26, %s1792_s26 }
 0xf4b   :  { %p2208_p0 = scmp.ne.s32.totalorder %s1792_s26, %s2207_s27  ;;  %p2213_p2 = scmp.lt.s32.totalorder %s2207_s27, %s2207_s27 }
 0xf4d   :  { %p2214_p3 = por %p2213_p2, %p2212_p1 }
 0xf4f   :  { %p2215_p4 = pnand %p2214_p3, %p2208_p0 }
 0xf57   :  { %v2126_v18 = vpop.eup %2125 }
 0xf58   :  { %598 = vrot.lane.b32.xlu1 %v2126_v18, %s2231_s13 }
 0xfca   :  { %v599_v20 = vpop.permute.xlu1 %598 }
 0xfcb   :  { %v601_v21 = vmul.f32 %v2124_v13, %v599_v20  ;;  %v865_v20 = vld [vmem:[#allocation2 + $0x2] sm:$0x3] }
 0xfcd   :  { %v2403_v22 = vpack.c.bf16 %v601_v21, %v601_v21  ;;  %v869_v21 = vpack.c.bf16 %v865_v20, %v865_v20 }
 0xfcf   :  { %612 = vrot.lane.b32.xlu0 %v2403_v22, %s2232_s14  ;;  %v606_v10 = vrot.slane %v2403_v22, 7  ;;  %v867_v22 = vld [vmem:[#allocation3 + $0x2] sm:$0x3] }
0x1041   :  { %v613_v23 = vpop.permute.xlu0 %612 }
0x1042   :  { %1979 = vmatmul.mubr.msk.bf16.vlgmr.msra.gmra.mxu1 %vm127_vm4, %v613_v23 }
0x1043   :  { %1994 = vmatprep.mubr.msk.bf16.mxu1 %vm2230_vm1, %v2229_v2  ;;  %1991 = vmatpush3.bf16.msra.mxu1 %v2074_v1 }
0x1044   :  { %1992 = vmatprep.subr.bf16.mxu1 %v2229_v2 }
0x1047   :  { %1993 = vmatpush3.bf16.msra.mxu1 %v2075_v59 }
0x1048   :  { %2006 = vmatprep.subr.bf16.mxu1 %v2229_v2 }
0x1102   :  { %v651_v25 = vpop.f32.mrf.mxu1 }
0x1103   :  { %v657_v26 = vadd.f32 %v651_v25, %v611_v24 }
0x1104   :  { %v1980_v27 = vpop.f32.mrf.mxu1 }
0x1105   :  { %2127 = vtanh.f32 %v657_v26  ;;  %v1826_v31 = vmul.f32 -1.442695, %v657_v26 }
0x1106   :  { %v654_v28 = vpop.f32.mrf.mxu1 }
0x1107   :  { %2129 = vpow2.f32 %v1826_v31 }
0x1108   :  { %v1981_v29 = vpop.f32.mrf.mxu1 }
0x1112   :  { %v2128_v30 = vpop.eup %2127 }
0x1113   :  { %667 = vrot.lane.b32.xlu1 %v2128_v30, %s2231_s13  ;;  %v1832_v30 = vld [vmem:[%s2695_s4 + $0x1] ss:$0 sm:$0xff]  ;;  %s2234_s4 = smov 96  }
0x1114   :  { %v2130_v32 = vpop.eup %2129 }
0x1115   :  { %v661_v33 = vadd.f32 1.0, %v2130_v32 }
0x1117   :  { %2131 = vrcp.f32 %v661_v33 }
0x1124   :  { %v2132_v34 = vpop.eup %2131 }
0x1125   :  { %v665_v37 = vmul.f32 %v2132_v34, %v595_v17 }
0x1185   :  { %v668_v35 = vpop.permute.xlu1 %667 }
0x1186   :  { %v670_v36 = vmul.f32 %v2132_v34, %v668_v35 }
0x1188   :  { %672 = vrot.lane.b32.xlu0 %v670_v36, %s2231_s13 }
0x11fa   :  { %v673_v39 = vpop.permute.xlu0 %672 }
0x11fb   :  { %v675_v40 = vadd.f32 %v673_v39, %v665_v37 }
0x11fd   :  { %2133 = vtanh.f32 %v675_v40 }
0x120a   :  { %v2134_v42 = vpop.eup %2133 }
0x120b   :  { %678 = vrot.lane.b32.xlu1 %v2134_v42, %s2231_s13 }
0x127d   :  { %v679_v43 = vpop.permute.xlu1 %678 }
0x127e   :  { %v681_v44 = vmul.f32 %v2132_v34, %v679_v43 }
0x1280   :  { %v682_v45 = vpack.c.bf16 %v681_v44, %v681_v44 }
0x1282   :  { %692 = vrot.lane.b32.xlu0 %v682_v45, %s2232_s14  ;;  %v686_v62 = vrot.slane %v682_v45, 6 }
0x12f4   :  { %v693_v46 = vpop.permute.xlu0 %692 }
0x12f5   :  { %1987 = vmatmul.mubr.msk.bf16.vlgmr.msra.gmra.mxu0 %vm127_vm4, %v693_v46 }
0x12f6   :  { %2002 = vmatprep.mubr.msk.bf16.mxu0 %vm2230_vm1, %v2229_v2  ;;  %1999 = vmatpush3.bf16.msra.mxu0 %v2444_v11 }
0x12f7   :  { %2000 = vmatprep.subr.bf16.mxu0 %v2229_v2 }
0x12fa   :  { %2001 = vmatpush3.bf16.msra.mxu0 %v2464_v5 }
0x12fb   :  { %2014 = vmatprep.subr.bf16.mxu0 %v2229_v2 }
0x12fd   :  { %2003 = vmatmul.mubr.msk.bf16.vlgmr.msra.gmra.mxu0 %vm127_vm4, %v869_v21 }
0x12fe   :  { %2015 = vmatpush3.bf16.msra.mxu0 %v2444_v11  ;;  %2018 = vmatprep.mubr.msk.bf16.mxu0 %vm2230_vm1, %v2229_v2 }
0x12ff   :  { %2016 = vmatprep.subr.bf16.mxu0 %v2229_v2 }
0x1302   :  { %2017 = vmatpush3.bf16.msra.mxu0 %v2464_v5 }
0x1303   :  { %2030 = vmatprep.subr.bf16.mxu0 %v2229_v2 }
0x13b5   :  { %v731_v48 = vpop.f32.mrf.mxu0 }
0x13b6   :  { %v737_v49 = vadd.f32 %v731_v48, %v691_v47 }
0x13b7   :  { %v1988_v50 = vpop.f32.mrf.mxu0 }
0x13b8   :  { %2135 = vtanh.f32 %v737_v49  ;;  %v1829_v54 = vmul.f32 -1.442695, %v737_v49 }
0x13b9   :  { %v734_v51 = vpop.f32.mrf.mxu0 }
0x13ba   :  { %2137 = vpow2.f32 %v1829_v54 }
0x13bb   :  { %v1989_v52 = vpop.f32.mrf.mxu0 }
0x13bd   :  { %v919_v26 = vpop.f32.mrf.mxu0 }
0x13bf   :  { %v2004_v27 = vpop.f32.mrf.mxu0 }
0x13c1   :  { %v922_v28 = vpop.f32.mrf.mxu0 }
0x13c3   :  { %v2005_v29 = vpop.f32.mrf.mxu0 }
0x13c5   :  { %v2136_v53 = vpop.eup %2135 }
0x13c6   :  { %747 = vrot.lane.b32.xlu1 %v2136_v53, %s2231_s13 }
0x13c7   :  { %v2138_v55 = vpop.eup %2137 }
0x13c8   :  { %v741_v56 = vadd.f32 1.0, %v2138_v55 }
0x13ca   :  { %2139 = vrcp.f32 %v741_v56 }
0x13d7   :  { %v2140_v57 = vpop.eup %2139 }
0x13d8   :  { %v745_v0 = vmul.f32 %v2140_v57, %v675_v40 }
0x1438   :  { %v748_v58 = vpop.permute.xlu1 %747 }
0x1439   :  { %v750_v60 = vmul.f32 %v2140_v57, %v748_v58 }
0x143b   :  { %752 = vrot.lane.b32.xlu0 %v750_v60, %s2231_s13 }
0x143f   :  { %204 = vrot.lane.b32.xlu0 %v2333_v38, %s2232_s14 }
0x1443   :  { %366 = vrot.lane.b32.xlu0 %v365_v61, %s2232_s14 }
0x1447   :  { %527 = vrot.lane.b32.xlu0 %v2389_v63, %s2232_s14 }
0x144b   :  { %687 = vrot.lane.b32.xlu0 %v686_v62, %s2232_s14 }
0x14ad   :  { %v753_v3 = vpop.permute.xlu0 %752 }
0x14ae   :  { %v2426_v4 = vadd.f32 %v753_v3, %v745_v0 }
0x14b0   :  { %2141 = vtanh.f32 %v2426_v4 }
0x14b1   :  { %v205_v6 = vpop.permute.xlu0 %204 }
0x14b2   :  { %208 = vst.msk [vmem:[#allocation4] sm:$0x1] %vm207_vm5, %v205_v6 }
0x14b5   :  { %v367_v38 = vpop.permute.xlu0 %366 }
0x14b6   :  { %370 = vst.msk [vmem:[#allocation4] sm:$0x4] %vm369_vm6, %v367_v38 }
0x14b9   :  { %v528_v19 = vpop.permute.xlu0 %527 }
0x14ba   :  { %530 = vst.msk [vmem:[#allocation4 + $0x4] sm:$0x1] %vm207_vm5, %v528_v19 }
0x14bd   :  { %v2142_v63 = vpop.eup %2141  ;;  %v688_v7 = vpop.permute.xlu0 %687 }
0x14be   :  { %690 = vst.msk [vmem:[#allocation4 + $0x4] sm:$0x4] %vm369_vm6, %v688_v7  ;;  %758 = vrot.lane.b32.xlu1 %v2142_v63, %s2231_s13 }
0x14c2   :  { %285 = vrot.lane.b32.xlu1 %v284_v8, %s2232_s14 }
0x14c6   :  { %447 = vrot.lane.b32.xlu1 %v446_v9, %s2232_s14 }
0x14ca   :  { %607 = vrot.lane.b32.xlu1 %v606_v10, %s2232_s14 }
0x1530   :  { %v759_v41 = vpop.permute.xlu1 %758 }
0x1531   :  { %v2455_v13 = vmul.f32 %v2140_v57, %v759_v41 }
0x1533   :  { %v1866_v14 = vpack.c.bf16 %v2455_v13, %v2455_v13 }
0x1534   :  { %v286_v16 = vpop.permute.xlu1 %285 }
0x1535   :  { %v766_v17 = vrot.slane %v1866_v14, 5  ;;  %289 = vst.msk [vmem:[#allocation4] sm:$0x2] %vm288_vm7, %v286_v16 }
0x1537   :  { %767 = vrot.lane.b32.xlu1 %v766_v17, %s2232_s14 }
0x1538   :  { %v448_v18 = vpop.permute.xlu1 %447 }
0x1539   :  { %451 = vst.msk [vmem:[#allocation4] sm:$0x8] %vm450_vm8, %v448_v18 }
0x153b   :  { %934 = vrot.lane.b32.xlu1 %v867_v22, %s2231_s13 }
0x153c   :  { %v608_v23 = vpop.permute.xlu1 %607 }
0x153d   :  { %610 = vst.msk [vmem:[#allocation4 + $0x4] sm:$0x2] %vm288_vm7, %v608_v23 }
0x15a9   :  { %v768_v24 = vpop.permute.xlu1 %767 }
0x15aa   :  { %770 = vst.msk [vmem:[#allocation4 + $0x4] sm:$0x8] %vm450_vm8, %v768_v24 }
0x15ad   :  { %v935_v48 = vpop.permute.xlu1 %934 }
0x15b1   :  { %v2077_v25 = vld [vmem:[#allocation4] sm:$0xff]  }
0x15b2   :  { %1995 = vmatmul.mubr.msk.bf16.vlgmr.msra.gmra.mxu1 %vm127_vm4, %v2077_v25 }
0x15b3   :  { %2007 = vmatpush3.bf16.msra.mxu1 %v2444_v11  ;;  %2010 = vmatprep.mubr.msk.bf16.mxu1 %vm2230_vm1, %v2229_v2 }
0x15b4   :  { %2008 = vmatprep.subr.bf16.mxu1 %v2229_v2 }
0x15b7   :  { %2009 = vmatpush3.bf16.msra.mxu1 %v2464_v5 }
0x15b8   :  { %2022 = vmatprep.subr.bf16.mxu1 %v2229_v2 }
0x1672   :  { %v850_v31 = vpop.f32.mrf.mxu1 }
0x1673   :  { %v851_v32 = vadd.f32 %v1832_v30, %v850_v31 }
0x1674   :  { %v1996_v33 = vpop.f32.mrf.mxu1 }
0x1675   :  { %857 = vst [vmem:[#allocation5] sm:$0xff] %v851_v32 }
0x1676   :  { %v853_v34 = vpop.f32.mrf.mxu1 }
0x1677   :  { %v854_v35 = vadd.f32 %v1832_v30, %v853_v34 }
0x1678   :  { %v1997_v36 = vpop.f32.mrf.mxu1 }
0x1679   :  { %858 = vst [vmem:[#allocation5 + $0x8] sm:$0xff] %v854_v35 }
0x167c   :  { %v868_v37 = vld [vmem:[#allocation5] sm:$0x3]  ;;  %v993_v57 = vld [vmem:[#allocation5 + $0x2] sm:$0x3]  ;;  %v1105_v16 = vld [vmem:[#allocation5 + $0x4] sm:$0x3] }
0x167d   :  { %v925_v39 = vadd.f32 %v919_v26, %v868_v37 }
0x167f   :  { %2143 = vtanh.f32 %v925_v39  ;;  %v1844_v42 = vmul.f32 -1.442695, %v925_v39  ;;  %v1217_v39 = vld [vmem:[#allocation5 + $0x6] sm:$0x3] }
0x1681   :  { %2145 = vpow2.f32 %v1844_v42 }
0x168c   :  { %v2144_v40 = vpop.eup %2143 }
0x168d   :  { %939 = vrot.lane.b32.xlu0 %v2144_v40, %s2231_s13 }
0x168e   :  { %v2146_v43 = vpop.eup %2145 }
0x168f   :  { %v929_v44 = vadd.f32 1.0, %v2146_v43 }
0x1691   :  { %2147 = vrcp.f32 %v929_v44 }
0x169e   :  { %v2148_v45 = vpop.eup %2147 }
0x169f   :  { %v937_v49 = vmul.f32 %v2148_v45, %v935_v48 }
0x16ff   :  { %v940_v46 = vpop.permute.xlu0 %939 }
0x1700   :  { %v942_v47 = vmul.f32 %v2148_v45, %v940_v46 }
0x1702   :  { %944 = vrot.lane.b32.xlu0 %v942_v47, %s2231_s13 }
0x1774   :  { %v945_v50 = vpop.permute.xlu0 %944 }
0x1775   :  { %v947_v51 = vadd.f32 %v945_v50, %v937_v49 }
0x1777   :  { %2149 = vtanh.f32 %v947_v51 }
0x1784   :  { %v2150_v52 = vpop.eup %2149 }
0x1785   :  { %950 = vrot.lane.b32.xlu1 %v2150_v52, %s2231_s13 }
0x17f7   :  { %v951_v53 = vpop.permute.xlu1 %950 }
0x17f8   :  { %v2498_v54 = vmul.f32 %v2148_v45, %v951_v53 }
0x17fa   :  { %v994_v55 = vpack.c.bf16 %v2498_v54, %v2498_v54 }
0x17fc   :  { %996 = vrot.lane.b32.xlu0 %v994_v55, %s2232_s14 }
0x186e   :  { %v997_v56 = vpop.permute.xlu0 %996 }
0x186f   :  { %2011 = vmatmul.mubr.msk.bf16.vlgmr.msra.gmra.mxu1 %vm127_vm4, %v997_v56 }
0x1870   :  { %2023 = vmatpush3.bf16.msra.mxu1 %v2444_v11  ;;  %2026 = vmatprep.mubr.msk.bf16.mxu1 %vm2230_vm1, %v2229_v2 }
0x1871   :  { %2024 = vmatprep.subr.bf16.mxu1 %v2229_v2 }
0x1874   :  { %2025 = vmatpush3.bf16.msra.mxu1 %v2464_v5 }
0x1875   :  { %2038 = vmatprep.subr.bf16.mxu1 %v2229_v2 }
0x192f   :  { %v1035_v58 = vpop.f32.mrf.mxu1 }
0x1930   :  { %v1041_v60 = vadd.f32 %v1035_v58, %v993_v57 }
0x1931   :  { %v2012_v61 = vpop.f32.mrf.mxu1 }
0x1932   :  { %2151 = vtanh.f32 %v1041_v60  ;;  %v1846_v6 = vmul.f32 -1.442695, %v1041_v60 }
0x1933   :  { %v1038_v62 = vpop.f32.mrf.mxu1 }
0x1934   :  { %2153 = vpow2.f32 %v1846_v6 }
0x1935   :  { %v2013_v0 = vpop.f32.mrf.mxu1 }
0x1936   :  { %v1329_v0 = vld [vmem:[#allocation5 + $0x8] sm:$0x3] }
0x193f   :  { %v2152_v3 = vpop.eup %2151 }
0x1940   :  { %1051 = vrot.lane.b32.xlu1 %v2152_v3, %s2231_s13 }
0x1941   :  { %v2154_v38 = vpop.eup %2153 }
0x1942   :  { %v1045_v19 = vadd.f32 1.0, %v2154_v38 }
0x1944   :  { %2155 = vrcp.f32 %v1045_v19 }
0x1951   :  { %v2156_v63 = vpop.eup %2155 }
0x1952   :  { %v1049_v9 = vmul.f32 %v2156_v63, %v947_v51 }
0x19b2   :  { %v1052_v7 = vpop.permute.xlu1 %1051 }
0x19b3   :  { %v1054_v8 = vmul.f32 %v2156_v63, %v1052_v7 }
0x19b5   :  { %1056 = vrot.lane.b32.xlu0 %v1054_v8, %s2231_s13 }
0x1a27   :  { %v1057_v10 = vpop.permute.xlu0 %1056 }
0x1a28   :  { %v1059_v1 = vadd.f32 %v1057_v10, %v1049_v9 }
0x1a2a   :  { %2157 = vtanh.f32 %v1059_v1 }
0x1a37   :  { %v2158_v59 = vpop.eup %2157 }
0x1a38   :  { %1062 = vrot.lane.b32.xlu1 %v2158_v59, %s2231_s13 }
0x1aaa   :  { %v1063_v41 = vpop.permute.xlu1 %1062 }
0x1aab   :  { %v2513_v12 = vmul.f32 %v2156_v63, %v1063_v41 }
0x1aad   :  { %v1106_v14 = vpack.c.bf16 %v2513_v12, %v2513_v12 }
0x1aaf   :  { %1108 = vrot.lane.b32.xlu0 %v1106_v14, %s2232_s14 }
0x1b21   :  { %v1109_v15 = vpop.permute.xlu0 %1108 }
0x1b22   :  { %2019 = vmatmul.mubr.msk.bf16.vlgmr.msra.gmra.mxu0 %vm127_vm4, %v1109_v15 }
0x1b23   :  { %2031 = vmatpush3.bf16.msra.mxu0 %v2444_v11  ;;  %2034 = vmatprep.mubr.msk.bf16.mxu0 %vm2230_vm1, %v2229_v2 }
0x1b24   :  { %2032 = vmatprep.subr.bf16.mxu0 %v2229_v2 }
0x1b27   :  { %2033 = vmatpush3.bf16.msra.mxu0 %v2464_v5 }
0x1b28   :  { %2046 = vmatprep.subr.bf16.mxu0 %v2229_v2 }
0x1be2   :  { %v1147_v17 = vpop.f32.mrf.mxu0 }
0x1be3   :  { %v1153_v18 = vadd.f32 %v1147_v17, %v1105_v16 }
0x1be4   :  { %v2020_v20 = vpop.f32.mrf.mxu0 }
0x1be5   :  { %2159 = vtanh.f32 %v1153_v18  ;;  %v1848_v24 = vmul.f32 -1.442695, %v1153_v18 }
0x1be6   :  { %v1150_v21 = vpop.f32.mrf.mxu0 }
0x1be7   :  { %2161 = vpow2.f32 %v1848_v24 }
0x1be8   :  { %v2021_v22 = vpop.f32.mrf.mxu0 }
0x1bf2   :  { %v2160_v23 = vpop.eup %2159 }
0x1bf3   :  { %1163 = vrot.lane.b32.xlu1 %v2160_v23, %s2231_s13  ;;  %v1441_v23 = vld [vmem:[#allocation5 + $0xa] sm:$0x3] }
0x1bf4   :  { %v2162_v25 = vpop.eup %2161 }
0x1bf5   :  { %v1157_v26 = vadd.f32 1.0, %v2162_v25 }
0x1bf7   :  { %2163 = vrcp.f32 %v1157_v26 }
0x1c04   :  { %v2164_v27 = vpop.eup %2163 }
0x1c05   :  { %v1161_v30 = vmul.f32 %v2164_v27, %v1059_v1 }
0x1c65   :  { %v1164_v28 = vpop.permute.xlu1 %1163 }
0x1c66   :  { %v1166_v29 = vmul.f32 %v2164_v27, %v1164_v28 }
0x1c68   :  { %1168 = vrot.lane.b32.xlu0 %v1166_v29, %s2231_s13 }
0x1cda   :  { %v1169_v31 = vpop.permute.xlu0 %1168 }
0x1cdb   :  { %v1171_v32 = vadd.f32 %v1169_v31, %v1161_v30 }
0x1cdd   :  { %2165 = vtanh.f32 %v1171_v32 }
0x1cea   :  { %v2166_v33 = vpop.eup %2165 }
0x1ceb   :  { %1174 = vrot.lane.b32.xlu1 %v2166_v33, %s2231_s13 }
0x1d5d   :  { %v1175_v34 = vpop.permute.xlu1 %1174 }
0x1d5e   :  { %v2528_v35 = vmul.f32 %v2164_v27, %v1175_v34 }
0x1d60   :  { %v1218_v36 = vpack.c.bf16 %v2528_v35, %v2528_v35 }
0x1d62   :  { %1220 = vrot.lane.b32.xlu0 %v1218_v36, %s2232_s14 }
0x1dd4   :  { %v1221_v37 = vpop.permute.xlu0 %1220 }
0x1dd5   :  { %2027 = vmatmul.mubr.msk.bf16.vlgmr.msra.gmra.mxu1 %vm127_vm4, %v1221_v37 }
0x1dd6   :  { %2039 = vmatpush3.bf16.msra.mxu1 %v2444_v11  ;;  %2042 = vmatprep.mubr.msk.bf16.mxu1 %vm2230_vm1, %v2229_v2 }
0x1dd7   :  { %2040 = vmatprep.subr.bf16.mxu1 %v2229_v2 }
0x1dda   :  { %2041 = vmatpush3.bf16.msra.mxu1 %v2464_v5 }
0x1ddb   :  { %2054 = vmatprep.subr.bf16.mxu1 %v2229_v2 }
0x1e95   :  { %v1259_v40 = vpop.f32.mrf.mxu1 }
0x1e96   :  { %v1265_v42 = vadd.f32 %v1259_v40, %v1217_v39 }
0x1e97   :  { %v2028_v43 = vpop.f32.mrf.mxu1 }
0x1e98   :  { %2167 = vtanh.f32 %v1265_v42  ;;  %v1850_v47 = vmul.f32 -1.442695, %v1265_v42 }
0x1e99   :  { %v1262_v44 = vpop.f32.mrf.mxu1 }
0x1e9a   :  { %2169 = vpow2.f32 %v1850_v47  ;;  %v1553_v44 = vld [vmem:[#allocation5 + $0xc] sm:$0x3] }
0x1e9b   :  { %v2029_v45 = vpop.f32.mrf.mxu1 }
0x1ea5   :  { %v2168_v46 = vpop.eup %2167 }
0x1ea6   :  { %1275 = vrot.lane.b32.xlu1 %v2168_v46, %s2231_s13 }
0x1ea7   :  { %v2170_v48 = vpop.eup %2169 }
0x1ea8   :  { %v1269_v49 = vadd.f32 1.0, %v2170_v48 }
0x1eaa   :  { %2171 = vrcp.f32 %v1269_v49 }
0x1eb7   :  { %v2172_v50 = vpop.eup %2171 }
0x1eb8   :  { %v1273_v53 = vmul.f32 %v2172_v50, %v1171_v32 }
0x1f18   :  { %v1276_v51 = vpop.permute.xlu1 %1275 }
0x1f19   :  { %v1278_v52 = vmul.f32 %v2172_v50, %v1276_v51 }
0x1f1b   :  { %1280 = vrot.lane.b32.xlu0 %v1278_v52, %s2231_s13 }
0x1f8d   :  { %v1281_v55 = vpop.permute.xlu0 %1280 }
0x1f8e   :  { %v1283_v56 = vadd.f32 %v1281_v55, %v1273_v53 }
0x1f90   :  { %2173 = vtanh.f32 %v1283_v56 }
0x1f9d   :  { %v2174_v57 = vpop.eup %2173 }
0x1f9e   :  { %1286 = vrot.lane.b32.xlu1 %v2174_v57, %s2231_s13 }
0x2010   :  { %v1287_v58 = vpop.permute.xlu1 %1286 }
0x2011   :  { %v2543_v60 = vmul.f32 %v2172_v50, %v1287_v58 }
0x2013   :  { %v1330_v61 = vpack.c.bf16 %v2543_v60, %v2543_v60 }
0x2015   :  { %1332 = vrot.lane.b32.xlu0 %v1330_v61, %s2232_s14 }
0x2087   :  { %v1333_v62 = vpop.permute.xlu0 %1332 }
0x2088   :  { %2035 = vmatmul.mubr.msk.bf16.vlgmr.msra.gmra.mxu0 %vm127_vm4, %v1333_v62 }
0x2089   :  { %2047 = vmatpush3.bf16.msra.mxu0 %v2444_v11  ;;  %2050 = vmatprep.mubr.msk.bf16.mxu0 %vm2230_vm1, %v2229_v2 }
0x208a   :  { %2048 = vmatprep.subr.bf16.mxu0 %v2229_v2 }
0x208d   :  { %2049 = vmatpush3.bf16.msra.mxu0 %v2464_v5 }
0x2148   :  { %v1371_v3 = vpop.f32.mrf.mxu0 }
0x2149   :  { %v1377_v6 = vadd.f32 %v1371_v3, %v1329_v0 }
0x214a   :  { %v2036_v38 = vpop.f32.mrf.mxu0 }
0x214b   :  { %2175 = vtanh.f32 %v1377_v6  ;;  %v1852_v8 = vmul.f32 -1.442695, %v1377_v6 }
0x214c   :  { %v1374_v19 = vpop.f32.mrf.mxu0 }
0x214d   :  { %2177 = vpow2.f32 %v1852_v8 }
0x214e   :  { %v2037_v63 = vpop.f32.mrf.mxu0 }
0x214f   :  { %v1665_v63 = vld [vmem:[#allocation5 + $0xe] sm:$0x3] }
0x2158   :  { %v2176_v7 = vpop.eup %2175 }
0x2159   :  { %1387 = vrot.lane.b32.xlu1 %v2176_v7, %s2231_s13 }
0x215a   :  { %v2178_v9 = vpop.eup %2177 }
0x215b   :  { %v1381_v10 = vadd.f32 1.0, %v2178_v9 }
0x215d   :  { %2179 = vrcp.f32 %v1381_v10 }
0x216a   :  { %v2180_v1 = vpop.eup %2179 }
0x216b   :  { %v1385_v14 = vmul.f32 %v2180_v1, %v1283_v56 }
0x21cb   :  { %v1388_v59 = vpop.permute.xlu1 %1387 }
0x21cc   :  { %v1390_v41 = vmul.f32 %v2180_v1, %v1388_v59 }
0x21ce   :  { %1392 = vrot.lane.b32.xlu0 %v1390_v41, %s2231_s13 }
0x2240   :  { %v1393_v15 = vpop.permute.xlu0 %1392 }
0x2241   :  { %v1395_v16 = vadd.f32 %v1393_v15, %v1385_v14 }
0x2243   :  { %2181 = vtanh.f32 %v1395_v16 }
0x2250   :  { %v2182_v17 = vpop.eup %2181 }
0x2251   :  { %1398 = vrot.lane.b32.xlu1 %v2182_v17, %s2231_s13 }
0x22c3   :  { %v1399_v18 = vpop.permute.xlu1 %1398 }
0x22c4   :  { %v2557_v20 = vmul.f32 %v2180_v1, %v1399_v18  ;;  %v958_v18 = vlaneseq }
0x22c6   :  { %v1442_v21 = vpack.c.bf16 %v2557_v20, %v2557_v20 }
0x22c8   :  { %1444 = vrot.lane.b32.xlu0 %v1442_v21, %s2232_s14 }
0x233a   :  { %v1445_v22 = vpop.permute.xlu0 %1444 }
0x233b   :  { %2043 = vmatmul.mubr.msk.bf16.vlgmr.msra.gmra.mxu1 %vm127_vm4, %v1445_v22  ;;  %v959_v22 = vshrl.u32 %v958_v18, 7 }
0x233c   :  { %2055 = vmatpush3.bf16.msra.mxu1 %v2444_v11  ;;  %2058 = vmatprep.mubr.msk.bf16.mxu1 %vm2230_vm1, %v2229_v2 }
0x233d   :  { %2056 = vmatprep.subr.bf16.mxu1 %v2229_v2 }
0x2340   :  { %2057 = vmatpush3.bf16.msra.mxu1 %v2464_v5 }
0x23fb   :  { %v1483_v24 = vpop.f32.mrf.mxu1 }
0x23fc   :  { %v1489_v25 = vadd.f32 %v1483_v24, %v1441_v23 }
0x23fd   :  { %v2044_v26 = vpop.f32.mrf.mxu1 }
0x23fe   :  { %2183 = vtanh.f32 %v1489_v25  ;;  %v1854_v30 = vmul.f32 -1.442695, %v1489_v25 }
0x23ff   :  { %v1486_v27 = vpop.f32.mrf.mxu1 }
0x2400   :  { %2185 = vpow2.f32 %v1854_v30  ;;  %v2596_v30 = vsub.s32 0, %v959_v22 }
0x2401   :  { %v2045_v28 = vpop.f32.mrf.mxu1 }
0x240b   :  { %v2184_v29 = vpop.eup %2183 }
0x240c   :  { %1499 = vrot.lane.b32.xlu1 %v2184_v29, %s2231_s13 }
0x240d   :  { %v2186_v11 = vpop.eup %2185 }
0x240e   :  { %v1493_v31 = vadd.f32 1.0, %v2186_v11 }
0x2410   :  { %2187 = vrcp.f32 %v1493_v31 }
0x241d   :  { %v2188_v32 = vpop.eup %2187 }
0x241e   :  { %v1497_v5 = vmul.f32 %v2188_v32, %v1395_v16  ;;  %v2233_v16 = vmov 1966171168  }
0x241f   :  { %v956_v17 = vunpack.c.l.s4 %v2233_v16 }
0x2421   :  { %v957_v21 = vunpack.c.0.s8 %v956_v17 }
0x2423   :  { %v2586_v23 = vsub.s32 %v957_v21, %v959_v22 }
0x2425   :  { %v961_v24 = vrot.slane %v2498_v54, %v2586_v23  ;;  %v1073_v28 = vrot.slane %v2513_v12, %v2586_v23  ;;  %v1185_v31 = vrot.slane %v2528_v35, %v2586_v23  ;;  %v1297_v12 = vrot.slane %v2543_v60, %v2586_v23 }
0x2427   :  { %v969_v27 = vrot.slane %v961_v24, %v2586_v23  ;;  %v1081_v11 = vrot.slane %v1073_v28, %v2586_v23 }
0x2429   :  { %v980_v54 = vrot.slane %v969_v27, %v2596_v30 }
0x247e   :  { %v1500_v33 = vpop.permute.xlu1 %1499 }
0x247f   :  { %v1502_v2 = vmul.f32 %v2188_v32, %v1500_v33  ;;  %v1092_v33 = vrot.slane %v1081_v11, %v2596_v30 }
0x2481   :  { %1504 = vrot.lane.b32.xlu0 %v1502_v2, %s2231_s13  ;;  %v1305_v2 = vrot.slane %v1297_v12, %v2586_v23 }
0x2483   :  { %v1316_v60 = vrot.slane %v1305_v2, %v2596_v30 }
0x24f3   :  { %v1505_v34 = vpop.permute.xlu0 %1504 }
0x24f4   :  { %v1507_v36 = vadd.f32 %v1505_v34, %v1497_v5  ;;  %v1409_v5 = vrot.slane %v2557_v20, %v2586_v23 }
0x24f6   :  { %2189 = vtanh.f32 %v1507_v36  ;;  %v1417_v34 = vrot.slane %v1409_v5, %v2586_v23 }
0x2503   :  { %v2190_v37 = vpop.eup %2189 }
0x2504   :  { %1510 = vrot.lane.b32.xlu1 %v2190_v37, %s2231_s13 }
0x2576   :  { %v1511_v39 = vpop.permute.xlu1 %1510 }
0x2577   :  { %v2571_v40 = vmul.f32 %v2188_v32, %v1511_v39  ;;  %v1193_v32 = vrot.slane %v1185_v31, %v2586_v23 }
0x2579   :  { %v1554_v42 = vpack.c.bf16 %v2571_v40, %v2571_v40  ;;  %v1204_v35 = vrot.slane %v1193_v32, %v2596_v30 }
0x257b   :  { %1556 = vrot.lane.b32.xlu0 %v1554_v42, %s2232_s14  ;;  %v1428_v42 = vrot.slane %v1417_v34, %v2596_v30 }
0x25ed   :  { %v1557_v43 = vpop.permute.xlu0 %1556 }
0x25ee   :  { %2051 = vmatmul.mubr.msk.bf16.vlgmr.msra.gmra.mxu0 %vm127_vm4, %v1557_v43 }
0x26ae   :  { %v1595_v45 = vpop.f32.mrf.mxu0 }
0x26af   :  { %v1601_v46 = vadd.f32 %v1595_v45, %v1553_v44 }
0x26b0   :  { %v2052_v47 = vpop.f32.mrf.mxu0 }
0x26b1   :  { %2191 = vtanh.f32 %v1601_v46  ;;  %v1856_v51 = vmul.f32 -1.442695, %v1601_v46 }
0x26b2   :  { %v1598_v48 = vpop.f32.mrf.mxu0 }
0x26b3   :  { %2193 = vpow2.f32 %v1856_v51  ;;  %v1074_v51 = vcombine.high %v1073_v28, %v1073_v28 }
0x26b4   :  { %v2053_v49 = vpop.f32.mrf.mxu0 }
0x26b5   :  { %v962_v49 = vcombine.high %v961_v24, %v961_v24 }
0x26be   :  { %v2192_v50 = vpop.eup %2191 }
0x26bf   :  { %1611 = vrot.lane.b32.xlu1 %v2192_v50, %s2231_s13 }
0x26c0   :  { %v2194_v52 = vpop.eup %2193 }
0x26c1   :  { %v1605_v53 = vadd.f32 1.0, %v2194_v52 }
0x26c3   :  { %2195 = vrcp.f32 %v1605_v53 }
0x26d0   :  { %v2196_v55 = vpop.eup %2195 }
0x26d1   :  { %v1609_v58 = vmul.f32 %v2196_v55, %v1507_v36  ;;  %v1521_v36 = vrot.slane %v2571_v40, %v2586_v23 }
0x26d3   :  { %v1529_v37 = vrot.slane %v1521_v36, %v2586_v23 }
0x26d5   :  { %v1540_v43 = vrot.slane %v1529_v37, %v2596_v30 }
0x2731   :  { %v1612_v56 = vpop.permute.xlu1 %1611 }
0x2732   :  { %v1614_v57 = vmul.f32 %v2196_v55, %v1612_v56 }
0x2734   :  { %1616 = vrot.lane.b32.xlu0 %v1614_v57, %s2231_s13  ;;  %v1088_v57 = vrot.slane %v1074_v51, %v2586_v23 }
0x27a6   :  { %v1617_v61 = vpop.permute.xlu0 %1616 }
0x27a7   :  { %v2579_v62 = vadd.f32 %v1617_v61, %v1609_v58  ;;  %v1298_v61 = vcombine.high %v1297_v12, %v1297_v12 }
0x27a9   :  { %2197 = vtanh.f32 %v2579_v62 }
0x27b6   :  { %v2198_v0 = vpop.eup %2197 }
0x27b7   :  { %1622 = vrot.lane.b32.xlu1 %v2198_v0, %s2231_s13 }
0x2829   :  { %v1623_v3 = vpop.permute.xlu1 %1622 }
0x282a   :  { %v1625_v6 = vmul.f32 %v2196_v55, %v1623_v3  ;;  %v1186_v55 = vcombine.high %v1185_v31, %v1185_v31 }
0x282c   :  { %v1666_v38 = vpack.c.bf16 %v1625_v6, %v1625_v6  ;;  %v1633_v39 = vrot.slane %v1625_v6, %v2586_v23  ;;  %v1200_v0 = vrot.slane %v1186_v55, %v2586_v23  ;;  %v1410_v6 = vcombine.high %v1409_v5, %v1409_v5 }
0x282e   :  { %1668 = vrot.lane.b32.xlu0 %v1666_v38, %s2232_s14  ;;  %v1641_v20 = vrot.slane %v1633_v39, %v2586_v23  ;;  %v1208_v38 = vrot.slane %v1200_v0, %v2596_v30 }
0x2830   :  { %v1652_v40 = vrot.slane %v1641_v20, %v2596_v30 }
0x28a0   :  { %v1669_v19 = vpop.permute.xlu0 %1668 }
0x28a1   :  { %2059 = vmatmul.mubr.msk.bf16.vlgmr.msra.gmra.mxu1 %vm127_vm4, %v1669_v19  ;;  %v1312_v19 = vrot.slane %v1298_v61, %v2586_v23 }
0x2961   :  { %v1707_v7 = vpop.f32.mrf.mxu1 }
0x2962   :  { %v1713_v8 = vadd.f32 %v1707_v7, %v1665_v63  ;;  %v1522_v7 = vcombine.high %v1521_v36, %v1521_v36 }
0x2963   :  { %v2060_v9 = vpop.f32.mrf.mxu1 }
0x2964   :  { %2199 = vtanh.f32 %v1713_v8  ;;  %v1858_v41 = vmul.f32 -1.442695, %v1713_v8  ;;  %v1320_v8 = vrot.slane %v1312_v19, %v2596_v30  ;;  %v1424_v9 = vrot.slane %v1410_v6, %v2586_v23 }
0x2965   :  { %v1710_v10 = vpop.f32.mrf.mxu1 }
0x2966   :  { %2201 = vpow2.f32 %v1858_v41  ;;  %v1536_v41 = vrot.slane %v1522_v7, %v2586_v23 }
0x2967   :  { %v2061_v1 = vpop.f32.mrf.mxu1 }
0x2968   :  { %v1634_v1 = vcombine.high %v1633_v39, %v1633_v39 }
0x2971   :  { %v2200_v59 = vpop.eup %2199 }
0x2972   :  { %1723 = vrot.lane.b32.xlu1 %v2200_v59, %s2231_s13  ;;  %v1432_v59 = vrot.slane %v1424_v9, %v2596_v30 }
0x2973   :  { %v2202_v14 = vpop.eup %2201 }
0x2974   :  { %v1717_v15 = vadd.f32 1.0, %v2202_v14  ;;  %v1544_v14 = vrot.slane %v1536_v41, %v2596_v30 }
0x2976   :  { %2203 = vrcp.f32 %v1717_v15  ;;  %v1648_v15 = vrot.slane %v1634_v1, %v2586_v23 }
0x2978   :  { %v1656_v16 = vrot.slane %v1648_v15, %v2596_v30 }
0x2983   :  { %v2590_v25 = vpop.eup %2203 }
0x2984   :  { %v1721_v44 = vmul.f32 %v2590_v25, %v2579_v62  ;;  %v1096_v62 = vrot.slane %v1088_v57, %v2596_v30 }
0x29e4   :  { %v1724_v26 = vpop.permute.xlu1 %1723 }
0x29e5   :  { %v1726_v29 = vmul.f32 %v2590_v25, %v1724_v26 }
0x29e7   :  { %1728 = vrot.lane.b32.xlu0 %v1726_v29, %s2231_s13 }
0x29eb   :  { %985 = vrot.lane.b32.xlu0 %v980_v54, %s2232_s14 }
0x29ef   :  { %1097 = vrot.lane.b32.xlu0 %v1092_v33, %s2232_s14 }
0x29f3   :  { %1209 = vrot.lane.b32.xlu0 %v1204_v35, %s2232_s14 }
0x29f7   :  { %1321 = vrot.lane.b32.xlu0 %v1316_v60, %s2232_s14 }
0x29fb   :  { %1433 = vrot.lane.b32.xlu0 %v1428_v42, %s2232_s14 }
0x29ff   :  { %1545 = vrot.lane.b32.xlu0 %v1540_v43, %s2232_s14 }
0x2a03   :  { %1657 = vrot.lane.b32.xlu0 %v1652_v40, %s2232_s14 }
0x2a07   :  { %772 = vrot.lane.b32.xlu0 %v2455_v13, %s2232_s14  ;;  %v976_v13 = vrot.slane %v962_v49, %v2586_v23 }
0x2a09   :  { %v984_v56 = vrot.slane %v976_v13, %v2596_v30 }
0x2a59   :  { %v1729_v45 = vpop.permute.xlu0 %1728 }
0x2a5a   :  { %v2632_v46 = vadd.f32 %v1729_v45, %v1721_v44 }
0x2a5c   :  { %2205 = vtanh.f32 %v2632_v46 }
0x2a5d   :  { %v986_v47 = vpop.permute.xlu0 %985 }
0x2a5e   :  { %991 = vst.msk [vmem:[#allocation6] sm:$0x1] %vm207_vm5, %v986_v47 }
0x2a61   :  { %v1098_v48 = vpop.permute.xlu0 %1097 }
0x2a62   :  { %1103 = vst.msk [vmem:[#allocation6 + $0x1] sm:$0x1] %vm207_vm5, %v1098_v48 }
0x2a65   :  { %v1210_v50 = vpop.permute.xlu0 %1209 }
0x2a66   :  { %1215 = vst.msk [vmem:[#allocation6 + $0x2] sm:$0x1] %vm207_vm5, %v1210_v50 }
0x2a69   :  { %v2206_v52 = vpop.eup %2205  ;;  %v1322_v53 = vpop.permute.xlu0 %1321 }
0x2a6a   :  { %1327 = vst.msk [vmem:[#allocation6 + $0x3] sm:$0x1] %vm207_vm5, %v1322_v53  ;;  %1734 = vrot.lane.b32.xlu1 %v2206_v52, %s2231_s13 }
0x2a6d   :  { %v1434_v58 = vpop.permute.xlu0 %1433 }
0x2a6e   :  { %1439 = vst.msk [vmem:[#allocation6 + $0x4] sm:$0x1] %vm207_vm5, %v1434_v58  ;;  %987 = vrot.lane.b32.xlu1 %v984_v56, %s2232_s14 }
0x2a71   :  { %v1546_v3 = vpop.permute.xlu0 %1545 }
0x2a72   :  { %1551 = vst.msk [vmem:[#allocation6 + $0x5] sm:$0x1] %vm207_vm5, %v1546_v3  ;;  %1099 = vrot.lane.b32.xlu1 %v1096_v62, %s2232_s14 }
0x2a75   :  { %v1658_v63 = vpop.permute.xlu0 %1657 }
0x2a76   :  { %1663 = vst.msk [vmem:[#allocation6 + $0x6] sm:$0x1] %vm207_vm5, %v1658_v63  ;;  %1211 = vrot.lane.b32.xlu1 %v1208_v38, %s2232_s14 }
0x2a79   :  { %v773_v10 = vpop.permute.xlu0 %772 }
0x2a7a   :  { %776 = vst.msk [vmem:[#allocation2] sm:$0x3] %vm34_vm3, %v773_v10  ;;  %1323 = vrot.lane.b32.xlu1 %v1320_v8, %s2232_s14 }
0x2a7e   :  { %1435 = vrot.lane.b32.xlu1 %v1432_v59, %s2232_s14 }
0x2a82   :  { %1547 = vrot.lane.b32.xlu1 %v1544_v14, %s2232_s14 }
0x2a86   :  { %1659 = vrot.lane.b32.xlu1 %v1656_v16, %s2232_s14 }
0x2a8a   :  { %778 = vrot.lane.b32.xlu1 %v2426_v4, %s2234_s4 }
0x2adc   :  { %v1735_v17 = vpop.permute.xlu1 %1734 }
0x2add   :  { %v1737_v18 = vmul.f32 %v2590_v25, %v1735_v17 }
0x2adf   :  { %v1745_v21 = vrot.slane %v1737_v18, %v2586_v23 }
0x2ae0   :  { %v988_v22 = vpop.permute.xlu1 %987 }
0x2ae1   :  { %v1746_v24 = vcombine.high %v1745_v21, %v1745_v21  ;;  %v1753_v26 = vrot.slane %v1745_v21, %v2586_v23  ;;  %992 = vst.msk [vmem:[#allocation6 + $0x8] sm:$0x1] %vm207_vm5, %v988_v22 }
0x2ae3   :  { %v1764_v27 = vrot.slane %v1753_v26, %v2596_v30  ;;  %v1760_v28 = vrot.slane %v1746_v24, %v2586_v23 }
0x2ae4   :  { %v1100_v29 = vpop.permute.xlu1 %1099 }
0x2ae5   :  { %1104 = vst.msk [vmem:[#allocation6 + $0x9] sm:$0x1] %vm207_vm5, %v1100_v29  ;;  %1769 = vrot.lane.b32.xlu0 %v1764_v27, %s2232_s14  ;;  %v1768_v4 = vrot.slane %v1760_v28, %v2596_v30 }
0x2ae7   :  { %1771 = vrot.lane.b32.xlu1 %v1768_v4, %s2232_s14 }
0x2ae8   :  { %v1212_v25 = vpop.permute.xlu1 %1211 }
0x2ae9   :  { %1216 = vst.msk [vmem:[#allocation6 + $0xa] sm:$0x1] %vm207_vm5, %v1212_v25  ;;  %1777 = vrot.lane.b32.xlu0 %v1737_v18, %s2232_s14 }
0x2aeb   :  { %1782 = vrot.lane.b32.xlu1 %v2632_v46, %s2234_s4 }
0x2aec   :  { %v1324_v11 = vpop.permute.xlu1 %1323 }
0x2aed   :  { %1328 = vst.msk [vmem:[#allocation6 + $0xb] sm:$0x1] %vm207_vm5, %v1324_v11 }
0x2af0   :  { %v1436_v23 = vpop.permute.xlu1 %1435 }
0x2af1   :  { %1440 = vst.msk [vmem:[#allocation6 + $0xc] sm:$0x1] %vm207_vm5, %v1436_v23 }
0x2af4   :  { %v1548_v31 = vpop.permute.xlu1 %1547 }
0x2af5   :  { %1552 = vst.msk [vmem:[#allocation6 + $0xd] sm:$0x1] %vm207_vm5, %v1548_v31 }
0x2af8   :  { %v1660_v54 = vpop.permute.xlu1 %1659 }
0x2af9   :  { %1664 = vst.msk [vmem:[#allocation6 + $0xe] sm:$0x1] %vm207_vm5, %v1660_v54 }
0x2afc   :  { %v779_v30 = vpop.permute.xlu1 %778 }
0x2afd   :  { %781 = vst.msk [vmem:[#allocation3] sm:$0x3] %vm34_vm3, %v779_v30 }
0x2b57   :  { %v1770_v32 = vpop.permute.xlu0 %1769 }
0x2b58   :  { %1775 = vst.msk [vmem:[#allocation6 + $0x7] sm:$0x1] %vm207_vm5, %v1770_v32 }
0x2b59   :  { %v1772_v12 = vpop.permute.xlu1 %1771 }
0x2b5a   :  { %1776 = vst.msk [vmem:[#allocation6 + $0xf] sm:$0x1] %vm207_vm5, %v1772_v12 }
0x2b5b   :  { %v1778_v33 = vpop.permute.xlu0 %1777 }
0x2b5c   :  { %2218 = shalt.err (!%p2215_p4)
}
0x2b5d   :  { %s2236_s28 = smov 128   ;;  %s2237_s29 = smov 8   ;;  %1780 = vst.msk [vmem:[#allocation2 + $0x2] sm:$0x3] %vm34_vm3, %v1778_v33  ;;  %v1783_v2 = vpop.permute.xlu1 %1782 }
0x2b5e   :  { %1797 = dma.vmem_to_hbm [thread:$0]  %s1792_s26, 256, %s2698_s7, [#allocation7], %s2236_s28, %s2236_s28, %s2237_s29   ;;  %1785 = vst.msk [vmem:[#allocation3 + $0x2] sm:$0x3] %vm34_vm3, %v1783_v2 }
0x2b5f   :  { %2227 = dma.done.wait [#allocation7], 256  }
0x2b60   :  { %2228 = vsyncadd [#allocation7], 4294967040 }
0x2b61   :  { %1801 = vsyncpa [#allocation7], 1 }

</bundles_post_ra>
